<compile_context>
chip_gen: v7x
topology: tpu7x:2x2x1
jax: 0.10.0
libtpu: 0.0.40
codegen_flags: <defaults>
</compile_context>

<pallas_src>
import functools

import jax
import jax.numpy as jnp
from jax.experimental import pallas as pl
from jax.experimental.pallas import tpu as pltpu


# -----------------------------------------------------------------------------
# Fused stage kernel builder
# -----------------------------------------------------------------------------
def _make_stage_kernel(K, act, eps, T, C_a, up_res, has_pre, has_affine,
                       has_res, emit_a, out_time_major):
    # reflect padding amounts of the trailing conv (matches pad_layer)
    p_l = K // 2
    p_r = K // 2 if K % 2 == 1 else K // 2 - 1

    def kernel(*refs):
        it = iter(refs)
        p_ref = next(it)
        res_ref = next(it) if has_res else None
        cm_ref = next(it) if has_affine else None
        cs_ref = next(it) if has_affine else None
        pw_ref = next(it) if has_pre else None
        pb_ref = next(it) if has_pre else None
        w_ref = next(it)
        b_ref = next(it)
        h_ref = next(it)
        a_ref = next(it) if emit_a else None

        x = p_ref[0].astype(jnp.float32)                      # (T, C_p)
        if has_pre:                                           # fused 1x1 in_conv
            x = jnp.dot(x.astype(jnp.bfloat16), pw_ref[...],
                        preferred_element_type=jnp.float32) + pb_ref[...]

        # Single-pass InstanceNorm1d (affine=False): per-channel stats over
        # time, f32, with the cond affine folded into one FMA-style normalize.
        inv_t = 1.0 / T
        mu = jnp.sum(x, axis=0, keepdims=True) * inv_t        # (1, C_a)
        ex2 = jnp.sum(x * x, axis=0, keepdims=True) * inv_t
        var = jnp.maximum(ex2 - mu * mu, 0.0)
        rstd = jax.lax.rsqrt(var + eps)
        if has_affine:                                        # append_cond
            scale = rstd * cs_ref[0]
            shift = cm_ref[0] - mu * scale
        else:
            scale = rstd
            shift = -(mu * scale)
        y = x * scale + shift

        if act == 'lrelu':
            y = jnp.where(y >= 0, y, 0.01 * y)                # nn.LeakyReLU default
        else:
            y = jnp.maximum(y, 0.0)                           # nn.ReLU
        # dropout: eval-mode identity

        if has_res:
            r = res_ref[0].astype(jnp.float32)                # (T // up_res, C_a)
            if up_res > 1:
                # nearest-neighbour upsample of the residual, in-register
                tr = r.shape[0]
                r = jnp.broadcast_to(r[:, None, :], (tr, up_res, C_a))
                r = r.reshape(tr * up_res, C_a)
            y = y + r
        if emit_a:                                            # residual for later
            a_ref[0] = y.astype(a_ref.dtype)

        if K == 1:
            yb = y.astype(jnp.bfloat16)
            if out_time_major:
                # Lane-dense, time-major store: w (C_out, C_a) x y^T -> (C_out, T)
                h = jax.lax.dot_general(
                    w_ref[0], yb, (((1,), (1,)), ((), ())),
                    preferred_element_type=jnp.float32) + b_ref[...]
            else:
                h = jnp.dot(yb, w_ref[0],
                            preferred_element_type=jnp.float32) + b_ref[...]
            h_ref[0] = h.astype(h_ref.dtype)
        else:
            # Reflect pad: only the K-1 boundary rows are copied (no (T, K*C)
            # im2col materialization). K per-tap MXU matmuls accumulate in f32.
            left = [y[p_l - j:p_l - j + 1, :] for j in range(p_l)]
            right = [y[T - 2 - j:T - 1 - j, :] for j in range(p_r)]
            ypad = jnp.concatenate(left + [y] + right, axis=0)  # (T+K-1, C_a)
            acc = None
            for j in range(K):
                win = ypad[j:j + T, :].astype(jnp.bfloat16)
                d = jnp.dot(win, w_ref[j], preferred_element_type=jnp.float32)
                acc = d if acc is None else acc + d
            h_ref[0] = (acc + b_ref[...]).astype(h_ref.dtype)

    return kernel


def _vmem_budget(blocks):
    """Scoped-VMEM budget from the block shapes: double-buffered pipeline
    buffers plus headroom for in-register f32 temporaries. Capped at 64 MiB so
    a compiling config stays within v7x physical VMEM."""
    byts = 0
    for shape, dtype in blocks:
        n = 1
        for d in shape:
            n *= int(d)
        byts += n * jnp.dtype(dtype).itemsize
    need = 2 * byts + (8 << 20)
    return int(min(max(need, 32 << 20), 64 << 20))


def fused_stage(p, w, b, *, K, act, eps=1e-5, res=None, up_res=1, cm=None,
                cs=None, pre_w=None, pre_b=None, emit_a=False,
                out_time_major=False, out_dtype=jnp.bfloat16):
    """One fused decoder stage.

    p:      (B, T, C_p) pre-norm activation.
    w:      (K, C_a, C_out) bf16 conv weight of the trailing conv
            (out_time_major: (1, C_out, C_a), pre-transposed).
    b:      (C_out,) f32 conv bias.
    res:    optional (B, T // up_res, C_a) residual (nearest-upsampled in-kernel).
    cm/cs:  optional (B, 1, C_a) conditional mean/std (append_cond).
    pre_w/pre_b: optional 1x1 conv applied before the norm (in_conv fusion).
    emit_a: also return the post-act(/res) activation (used as later residual).
    """
    B, T, Cp = p.shape
    C_a = pre_w.shape[1] if pre_w is not None else Cp
    Cout = w.shape[1] if out_time_major else w.shape[2]
    has_res = res is not None
    has_affine = cm is not None
    has_pre = pre_w is not None
    assert T % up_res == 0

    kernel = _make_stage_kernel(K, act, eps, T, C_a, up_res, has_pre,
                                has_affine, has_res, emit_a, out_time_major)

    blocks = []

    def spec(arr, blk, idx):
        blocks.append((blk, arr.dtype))
        return pl.BlockSpec(blk, idx)

    inputs = [p]
    in_specs = [spec(p, (1, T, Cp), lambda i: (i, 0, 0))]
    if has_res:
        Tr = T // up_res
        inputs.append(res)
        in_specs.append(spec(res, (1, Tr, C_a), lambda i: (i, 0, 0)))
    if has_affine:
        inputs += [cm, cs]
        in_specs += [spec(cm, (1, 1, C_a), lambda i: (i, 0, 0)),
                     spec(cs, (1, 1, C_a), lambda i: (i, 0, 0))]
    if has_pre:
        pre_b2 = pre_b.reshape(1, C_a)
        inputs += [pre_w, pre_b2]
        in_specs += [spec(pre_w, pre_w.shape, lambda i: (0, 0)),
                     spec(pre_b2, (1, C_a), lambda i: (0, 0))]
    b2 = b.reshape(Cout, 1) if out_time_major else b.reshape(1, Cout)
    inputs += [w, b2]
    in_specs += [spec(w, w.shape, lambda i: (0, 0, 0)),
                 spec(b2, b2.shape, lambda i: (0, 0))]

    if out_time_major:
        h_shape = jax.ShapeDtypeStruct((B, Cout, T), jnp.float32)
        h_spec = spec(h_shape, (1, Cout, T), lambda i: (i, 0, 0))
    else:
        h_shape = jax.ShapeDtypeStruct((B, T, Cout), out_dtype)
        h_spec = spec(h_shape, (1, T, Cout), lambda i: (i, 0, 0))
    if emit_a:
        a_shape = jax.ShapeDtypeStruct((B, T, C_a), out_dtype)
        out_shape = (h_shape, a_shape)
        out_specs = (h_spec, spec(a_shape, (1, T, C_a), lambda i: (i, 0, 0)))
    else:
        out_shape = h_shape
        out_specs = h_spec

    return pl.pallas_call(
        kernel,
        out_shape=out_shape,
        grid=(B,),
        in_specs=in_specs,
        out_specs=out_specs,
        compiler_params=pltpu.CompilerParams(
            dimension_semantics=("parallel",),
            vmem_limit_bytes=_vmem_budget(blocks)),
    )(*inputs)


# -----------------------------------------------------------------------------
# Parameter setup + weight preprocessing (plain JAX, done once per call)
# -----------------------------------------------------------------------------
def init_decoder_params(key, c_in, c_cond, c_h, c_out, kernel_size,
                        n_conv_blocks, upsample):
    keys = iter(jax.random.split(key, 64))

    def nrm(shape, scale):
        return scale * jax.random.normal(next(keys), shape, dtype=jnp.float32)

    p = {}
    p['in_conv_w'] = nrm((1, c_in, c_h), 1.0 / (c_in ** 0.5))
    p['in_conv_b'] = nrm((c_h,), 0.1)
    p['first_w'] = [nrm((kernel_size, c_h, c_h), 1.0 / ((c_h * kernel_size) ** 0.5))
                    for _ in range(n_conv_blocks)]
    p['first_b'] = [nrm((c_h,), 0.1) for _ in range(n_conv_blocks)]
    p['second_w'] = [nrm((kernel_size, c_h, c_h * up), 1.0 / ((c_h * kernel_size) ** 0.5))
                     for up in upsample]
    p['second_b'] = [nrm((c_h * up,), 0.1) for up in upsample]
    p['affine_w'] = [nrm((c_cond, 2 * c_h), 1.0 / (c_cond ** 0.5))
                     for _ in range(2 * n_conv_blocks)]
    p['affine_b'] = [nrm((2 * c_h,), 0.1) for _ in range(2 * n_conv_blocks)]
    p['out_conv_w'] = nrm((1, c_h, c_out), 1.0 / (c_h ** 0.5))
    p['out_conv_b'] = nrm((c_out,), 0.1)
    return p


def _prep_weights(params, upsample):
    c_h = params['in_conv_w'].shape[2]
    mx = jnp.bfloat16      # MXU-native matmul-input dtype (f32 accumulation)
    prep = {
        'pre_w': params['in_conv_w'][0].astype(mx),              # (c_in, c_h)
        'pre_b': params['in_conv_b'],
        'first_w': [w.astype(mx) for w in params['first_w']],    # (K, c_h, c_h)
        'first_b': params['first_b'],
        # out_conv weight pre-transposed to (1, c_out, c_h): the final stage
        # computes w @ y^T -> (c_out, T), a lane-dense time-major store.
        'out_w': params['out_conv_w'][0].T[None].astype(mx),
        'out_b': params['out_conv_b'],
    }
    second_w, second_b = [], []
    for l, up in enumerate(upsample):
        w = params['second_w'][l]                                # (K, c_h, c_h*up)
        K = w.shape[0]
        # Regroup output columns from (c*up + s) to (s*c_h + c) so the pixel
        # shuffle becomes a free row-major reshape of the kernel output.
        wg = (w.reshape(K, c_h, c_h, up)
               .transpose(0, 1, 3, 2)
               .reshape(K, c_h, up * c_h))
        bg = params['second_b'][l].reshape(c_h, up).T.reshape(up * c_h)
        second_w.append(wg.astype(mx))
        second_b.append(bg)
    prep['second_w'] = second_w
    prep['second_b'] = second_b
    return prep


# -----------------------------------------------------------------------------
# Decoder forward
# -----------------------------------------------------------------------------
def decoder_forward(params, z, cond, *, kernel_size, n_conv_blocks, upsample, act):
    """z: (B, c_in, T) NCW (PyTorch convention); cond: (B, c_cond).
    Returns (B, c_out, T_out) NCW."""
    assert n_conv_blocks >= 1
    x = jnp.transpose(z, (0, 2, 1)).astype(jnp.float32)          # (B, T, c_in)
    cond = cond.astype(jnp.float32)
    B = x.shape[0]
    c_h = params['in_conv_w'].shape[2]

    # Conditional affine Linear(cond), hoisted out of the kernels (tiny GEMMs).
    affs = []
    for i in range(2 * n_conv_blocks):
        a = cond @ params['affine_w'][i] + params['affine_b'][i]  # (B, 2*c_h)
        affs.append((a[:, :c_h].reshape(B, 1, c_h),               # mean
                     a[:, c_h:].reshape(B, 1, c_h)))              # std

    wp = _prep_weights(params, upsample)

    # Stage 0: in_conv(1x1) + norm + act, fused with block 0's first conv.
    h, a_res = fused_stage(x, wp['first_w'][0], params['first_b'][0],
                           K=kernel_size, act=act,
                           pre_w=wp['pre_w'], pre_b=wp['pre_b'], emit_a=True)

    out = None
    for l in range(n_conv_blocks):
        up = upsample[l]
        cm, cs = affs[2 * l]
        # norm + append_cond(2l) + act, fused with block l's second conv
        # (weight columns pre-grouped -> pixel shuffle is the reshape below).
        h2g = fused_stage(h, wp['second_w'][l], wp['second_b'][l],
                          K=kernel_size, act=act, cm=cm, cs=cs)
        Tcur = h2g.shape[1]
        p_next = h2g.reshape(B, Tcur * up, c_h)       # pixel_shuffle_1d (free)
        cm2, cs2 = affs[2 * l + 1]
        if l + 1 < n_conv_blocks:
            # norm + append_cond(2l+1) + act + residual (nearest-upsampled
            # in-kernel), fused with block l+1's first conv; also emits the
            # post-residual activation (next residual).
            h, a_res = fused_stage(p_next, wp['first_w'][l + 1],
                                   params['first_b'][l + 1],
                                   K=kernel_size, act=act,
                                   res=a_res, up_res=up,
                                   cm=cm2, cs=cs2, emit_a=True)
        else:
            # final: norm + append_cond + act + residual, fused with the 1x1
            # out_conv, emitted time-major (lane-dense (c_out, T) store, no
            # wrapper transpose).
            out = fused_stage(p_next, wp['out_w'], wp['out_b'],
                              K=1, act=act, res=a_res, up_res=up,
                              cm=cm2, cs=cs2, out_time_major=True)

    return out                                                   # (B, c_out, T_out)


# -----------------------------------------------------------------------------
# main
# -----------------------------------------------------------------------------
if __name__ == "__main__":
    # module config (small, consistent with Decoder.__init__)
    B, T = 2, 8
    c_in, c_cond, c_h, c_out = 4, 8, 32, 4
    kernel_size = 3
    n_conv_blocks = 2
    up_list = [2, 1]
    act = 'lrelu'
    # sn=False, dropout_rate -> eval-mode identity

    key = jax.random.PRNGKey(0)
    k_params, k_z, k_cond = jax.random.split(key, 3)
    params = init_decoder_params(k_params, c_in, c_cond, c_h, c_out,
                                 kernel_size, n_conv_blocks, up_list)

    z = jax.random.normal(k_z, (B, c_in, T), dtype=jnp.float32)      # NCW
    cond = jax.random.normal(k_cond, (B, c_cond), dtype=jnp.float32)

    fwd = jax.jit(functools.partial(decoder_forward, params,
                                    kernel_size=kernel_size,
                                    n_conv_blocks=n_conv_blocks,
                                    upsample=up_list, act=act))
    out = fwd(z, cond)
    jax.block_until_ready(out)

    expected_T = T
    for u in up_list:
        expected_T *= u
    assert out.shape == (B, c_out, expected_T), out.shape
    assert out.dtype == jnp.float32
    assert jnp.all(jnp.isfinite(out))
    print("KERNEL_OK")
</pallas_src>

<mosaic_0001>
module attributes {stable_mosaic.version = 11 : i64} {
  func.func @kernel(%arg0: i32, %arg1: memref<1x8x4xf32, #tpu.memory_space<vmem>>, %arg2: memref<4x32xbf16, #tpu.memory_space<vmem>>, %arg3: memref<1x32xf32, #tpu.memory_space<vmem>>, %arg4: memref<3x32x32xbf16, #tpu.memory_space<vmem>>, %arg5: memref<1x32xf32, #tpu.memory_space<vmem>>, %arg6: memref<1x8x32xbf16, #tpu.memory_space<vmem>>, %arg7: memref<1x8x32xbf16, #tpu.memory_space<vmem>>) attributes {dimension_semantics = [#tpu.dimension_semantics<parallel>], iteration_bounds = array<i64: 2>, scalar_prefetch = 0 : i64, scratch_operands = 0 : i64, tpu.core_type = #tpu.core_type<tc>, window_params = [{transform_indices = @transform_0, window_bounds = array<i64: 1, 8, 4>}, {pipeline_mode = #tpu.pipeline_mode<synchronous>, transform_indices = @transform_1, window_bounds = array<i64: 4, 32>}, {pipeline_mode = #tpu.pipeline_mode<synchronous>, transform_indices = @transform_2, window_bounds = array<i64: 1, 32>}, {pipeline_mode = #tpu.pipeline_mode<synchronous>, transform_indices = @transform_3, window_bounds = array<i64: 3, 32, 32>}, {pipeline_mode = #tpu.pipeline_mode<synchronous>, transform_indices = @transform_4, window_bounds = array<i64: 1, 32>}, {transform_indices = @transform_5, window_bounds = array<i64: 1, 8, 32>}, {transform_indices = @transform_6, window_bounds = array<i64: 1, 8, 32>}]} {
    %c0 = arith.constant 0 : index
    %c0_0 = arith.constant 0 : index
    %c0_1 = arith.constant 0 : index
    %0 = vector.load %arg1[%c0, %c0_0, %c0_1] : memref<1x8x4xf32, #tpu.memory_space<vmem>>, vector<1x8x4xf32>
    %1 = vector.shape_cast %0 : vector<1x8x4xf32> to vector<8x4xf32>
    %2 = arith.truncf %1 : vector<8x4xf32> to vector<8x4xbf16>
    %c0_2 = arith.constant 0 : index
    %c0_3 = arith.constant 0 : index
    %3 = vector.load %arg2[%c0_2, %c0_3] : memref<4x32xbf16, #tpu.memory_space<vmem>>, vector<4x32xbf16>
    %cst = arith.constant dense<0.000000e+00> : vector<8x32xf32>
    %4 = tpu.matmul %2, %3, %cst {dimension_numbers = #tpu.dot_dimension_numbers<[1], [0], [0], [1], [0, 0, 1, 1], [], []>} : vector<8x4xbf16>, vector<4x32xbf16>, vector<8x32xf32> -> vector<8x32xf32>
    %c0_4 = arith.constant 0 : index
    %c0_5 = arith.constant 0 : index
    %5 = vector.load %arg3[%c0_4, %c0_5] : memref<1x32xf32, #tpu.memory_space<vmem>>, vector<1x32xf32>
    %6 = vector.broadcast %5 : vector<1x32xf32> to vector<8x32xf32>
    %7 = arith.addf %4, %6 : vector<8x32xf32>
    %cst_6 = arith.constant dense<0.000000e+00> : vector<32xf32>
    %8 = vector.multi_reduction <add>, %7, %cst_6 [0] : vector<8x32xf32> to vector<32xf32>
    %9 = vector.shape_cast %8 : vector<32xf32> to vector<1x32xf32>
    %cst_7 = arith.constant 1.250000e-01 : f32
    %10 = vector.broadcast %cst_7 : f32 to vector<1x32xf32>
    %11 = arith.mulf %9, %10 : vector<1x32xf32>
    %12 = arith.mulf %7, %7 : vector<8x32xf32>
    %cst_8 = arith.constant dense<0.000000e+00> : vector<32xf32>
    %13 = vector.multi_reduction <add>, %12, %cst_8 [0] : vector<8x32xf32> to vector<32xf32>
    %14 = vector.shape_cast %13 : vector<32xf32> to vector<1x32xf32>
    %cst_9 = arith.constant 1.250000e-01 : f32
    %15 = vector.broadcast %cst_9 : f32 to vector<1x32xf32>
    %16 = arith.mulf %14, %15 : vector<1x32xf32>
    %17 = arith.mulf %11, %11 : vector<1x32xf32>
    %18 = arith.subf %16, %17 : vector<1x32xf32>
    %cst_10 = arith.constant 0.000000e+00 : f32
    %19 = vector.broadcast %cst_10 : f32 to vector<1x32xf32>
    %20 = arith.maximumf %18, %19 : vector<1x32xf32>
    %cst_11 = arith.constant 9.99999974E-6 : f32
    %21 = vector.broadcast %cst_11 : f32 to vector<1x32xf32>
    %22 = arith.addf %20, %21 : vector<1x32xf32>
    %23 = math.rsqrt %22 : vector<1x32xf32>
    %24 = arith.mulf %11, %23 : vector<1x32xf32>
    %cst_12 = arith.constant 0.000000e+00 : f32
    %25 = vector.broadcast %cst_12 : f32 to vector<1x32xf32>
    %26 = arith.subf %25, %24 : vector<1x32xf32>
    %27 = vector.broadcast %23 : vector<1x32xf32> to vector<8x32xf32>
    %28 = arith.mulf %7, %27 : vector<8x32xf32>
    %29 = vector.broadcast %26 : vector<1x32xf32> to vector<8x32xf32>
    %30 = arith.addf %28, %29 : vector<8x32xf32>
    %cst_13 = arith.constant 0.000000e+00 : f32
    %31 = vector.broadcast %cst_13 : f32 to vector<8x32xf32>
    %32 = arith.cmpf oge, %30, %31 : vector<8x32xf32>
    %cst_14 = arith.constant 0.00999999977 : f32
    %33 = vector.broadcast %cst_14 : f32 to vector<8x32xf32>
    %34 = arith.mulf %33, %30 : vector<8x32xf32>
    %35 = arith.select %32, %30, %34 : vector<8x32xi1>, vector<8x32xf32>
    %36 = arith.truncf %35 : vector<8x32xf32> to vector<8x32xbf16>
    %c0_15 = arith.constant 0 : index
    %c0_16 = arith.constant 0 : index
    %c0_17 = arith.constant 0 : index
    %37 = vector.load %arg7[%c0_15, %c0_16, %c0_17] : memref<1x8x32xbf16, #tpu.memory_space<vmem>>, vector<1x8x32xbf16>
    %38 = vector.shape_cast %37 : vector<1x8x32xbf16> to vector<8x32xbf16>
    %39 = vector.shape_cast %36 : vector<8x32xbf16> to vector<1x8x32xbf16>
    tpu.vector_store %arg7[%c0_15, %c0_16, %c0_17], %39 {strides = array<i32>} : memref<1x8x32xbf16, #tpu.memory_space<vmem>>, vector<1x8x32xbf16>,
    %40 = vector.extract_strided_slice %35 {offsets = [1, 0], sizes = [1, 32], strides = [1, 1]} : vector<8x32xf32> to vector<1x32xf32>
    %41 = vector.extract_strided_slice %35 {offsets = [6, 0], sizes = [1, 32], strides = [1, 1]} : vector<8x32xf32> to vector<1x32xf32>
    %42 = tpu.concatenate %40, %35, %41 in 0 : vector<1x32xf32>, vector<8x32xf32>, vector<1x32xf32> -> vector<10x32xf32>
    %43 = vector.extract_strided_slice %42 {offsets = [0, 0], sizes = [8, 32], strides = [1, 1]} : vector<10x32xf32> to vector<8x32xf32>
    %44 = arith.truncf %43 : vector<8x32xf32> to vector<8x32xbf16>
    %c0_18 = arith.constant 0 : index
    %c0_19 = arith.constant 0 : index
    %c0_20 = arith.constant 0 : index
    %45 = vector.load %arg4[%c0_18, %c0_19, %c0_20] : memref<3x32x32xbf16, #tpu.memory_space<vmem>>, vector<1x32x32xbf16>
    %46 = vector.shape_cast %45 : vector<1x32x32xbf16> to vector<32x32xbf16>
    %cst_21 = arith.constant dense<0.000000e+00> : vector<8x32xf32>
    %47 = tpu.matmul %44, %46, %cst_21 {dimension_numbers = #tpu.dot_dimension_numbers<[1], [0], [0], [1], [0, 0, 1, 1], [], []>} : vector<8x32xbf16>, vector<32x32xbf16>, vector<8x32xf32> -> vector<8x32xf32>
    %48 = vector.extract_strided_slice %42 {offsets = [1, 0], sizes = [8, 32], strides = [1, 1]} : vector<10x32xf32> to vector<8x32xf32>
    %49 = arith.truncf %48 : vector<8x32xf32> to vector<8x32xbf16>
    %c1 = arith.constant 1 : index
    %c0_22 = arith.constant 0 : index
    %c0_23 = arith.constant 0 : index
    %50 = vector.load %arg4[%c1, %c0_22, %c0_23] : memref<3x32x32xbf16, #tpu.memory_space<vmem>>, vector<1x32x32xbf16>
    %51 = vector.shape_cast %50 : vector<1x32x32xbf16> to vector<32x32xbf16>
    %cst_24 = arith.constant dense<0.000000e+00> : vector<8x32xf32>
    %52 = tpu.matmul %49, %51, %cst_24 {dimension_numbers = #tpu.dot_dimension_numbers<[1], [0], [0], [1], [0, 0, 1, 1], [], []>} : vector<8x32xbf16>, vector<32x32xbf16>, vector<8x32xf32> -> vector<8x32xf32>
    %53 = arith.addf %47, %52 : vector<8x32xf32>
    %54 = vector.extract_strided_slice %42 {offsets = [2, 0], sizes = [8, 32], strides = [1, 1]} : vector<10x32xf32> to vector<8x32xf32>
    %55 = arith.truncf %54 : vector<8x32xf32> to vector<8x32xbf16>
    %c2 = arith.constant 2 : index
    %c0_25 = arith.constant 0 : index
    %c0_26 = arith.constant 0 : index
    %56 = vector.load %arg4[%c2, %c0_25, %c0_26] : memref<3x32x32xbf16, #tpu.memory_space<vmem>>, vector<1x32x32xbf16>
    %57 = vector.shape_cast %56 : vector<1x32x32xbf16> to vector<32x32xbf16>
    %cst_27 = arith.constant dense<0.000000e+00> : vector<8x32xf32>
    %58 = tpu.matmul %55, %57, %cst_27 {dimension_numbers = #tpu.dot_dimension_numbers<[1], [0], [0], [1], [0, 0, 1, 1], [], []>} : vector<8x32xbf16>, vector<32x32xbf16>, vector<8x32xf32> -> vector<8x32xf32>
    %59 = arith.addf %53, %58 : vector<8x32xf32>
    %c0_28 = arith.constant 0 : index
    %c0_29 = arith.constant 0 : index
    %60 = vector.load %arg5[%c0_28, %c0_29] : memref<1x32xf32, #tpu.memory_space<vmem>>, vector<1x32xf32>
    %61 = vector.broadcast %60 : vector<1x32xf32> to vector<8x32xf32>
    %62 = arith.addf %59, %61 : vector<8x32xf32>
    %63 = arith.truncf %62 : vector<8x32xf32> to vector<8x32xbf16>
    %c0_30 = arith.constant 0 : index
    %c0_31 = arith.constant 0 : index
    %c0_32 = arith.constant 0 : index
    %64 = vector.load %arg6[%c0_30, %c0_31, %c0_32] : memref<1x8x32xbf16, #tpu.memory_space<vmem>>, vector<1x8x32xbf16>
    %65 = vector.shape_cast %64 : vector<1x8x32xbf16> to vector<8x32xbf16>
    %66 = vector.shape_cast %63 : vector<8x32xbf16> to vector<1x8x32xbf16>
    tpu.vector_store %arg6[%c0_30, %c0_31, %c0_32], %66 {strides = array<i32>} : memref<1x8x32xbf16, #tpu.memory_space<vmem>>, vector<1x8x32xbf16>,
    return
  }
  func.func @transform_0(%arg0: i32) -> (i32, i32, i32) {
    %c0_i32 = arith.constant 0 : i32
    %c0_i32_0 = arith.constant 0 : i32
    %c0_i32_1 = arith.constant 0 : i32
    return %arg0, %c0_i32, %c0_i32_0 : i32, i32, i32
  }
  func.func @transform_1(%arg0: i32) -> (i32, i32) {
    %c0_i32 = arith.constant 0 : i32
    %c0_i32_0 = arith.constant 0 : i32
    %c0_i32_1 = arith.constant 0 : i32
    return %c0_i32, %c0_i32_0 : i32, i32
  }
  func.func @transform_2(%arg0: i32) -> (i32, i32) {
    %c0_i32 = arith.constant 0 : i32
    %c0_i32_0 = arith.constant 0 : i32
    %c0_i32_1 = arith.constant 0 : i32
    return %c0_i32, %c0_i32_0 : i32, i32
  }
  func.func @transform_3(%arg0: i32) -> (i32, i32, i32) {
    %c0_i32 = arith.constant 0 : i32
    %c0_i32_0 = arith.constant 0 : i32
    %c0_i32_1 = arith.constant 0 : i32
    %c0_i32_2 = arith.constant 0 : i32
    return %c0_i32, %c0_i32_0, %c0_i32_1 : i32, i32, i32
  }
  func.func @transform_4(%arg0: i32) -> (i32, i32) {
    %c0_i32 = arith.constant 0 : i32
    %c0_i32_0 = arith.constant 0 : i32
    %c0_i32_1 = arith.constant 0 : i32
    return %c0_i32, %c0_i32_0 : i32, i32
  }
  func.func @transform_5(%arg0: i32) -> (i32, i32, i32) {
    %c0_i32 = arith.constant 0 : i32
    %c0_i32_0 = arith.constant 0 : i32
    %c0_i32_1 = arith.constant 0 : i32
    return %arg0, %c0_i32, %c0_i32_0 : i32, i32, i32
  }
  func.func @transform_6(%arg0: i32) -> (i32, i32, i32) {
    %c0_i32 = arith.constant 0 : i32
    %c0_i32_0 = arith.constant 0 : i32
    %c0_i32_1 = arith.constant 0 : i32
    return %arg0, %c0_i32, %c0_i32_0 : i32, i32, i32
  }
}

module attributes {stable_mosaic.version = 11 : i64} {
  func.func @kernel(%arg0: i32, %arg1: memref<1x16x32xbf16, #tpu.memory_space<vmem>>, %arg2: memref<1x1x32xf32, #tpu.memory_space<vmem>>, %arg3: memref<1x1x32xf32, #tpu.memory_space<vmem>>, %arg4: memref<3x32x32xbf16, #tpu.memory_space<vmem>>, %arg5: memref<1x32xf32, #tpu.memory_space<vmem>>, %arg6: memref<1x16x32xbf16, #tpu.memory_space<vmem>>) attributes {dimension_semantics = [#tpu.dimension_semantics<parallel>], iteration_bounds = array<i64: 2>, scalar_prefetch = 0 : i64, scratch_operands = 0 : i64, tpu.core_type = #tpu.core_type<tc>, window_params = [{transform_indices = @transform_0, window_bounds = array<i64: 1, 16, 32>}, {transform_indices = @transform_1, window_bounds = array<i64: 1, 1, 32>}, {transform_indices = @transform_2, window_bounds = array<i64: 1, 1, 32>}, {pipeline_mode = #tpu.pipeline_mode<synchronous>, transform_indices = @transform_3, window_bounds = array<i64: 3, 32, 32>}, {pipeline_mode = #tpu.pipeline_mode<synchronous>, transform_indices = @transform_4, window_bounds = array<i64: 1, 32>}, {transform_indices = @transform_5, window_bounds = array<i64: 1, 16, 32>}]} {
    %c0 = arith.constant 0 : index
    %c0_0 = arith.constant 0 : index
    %c0_1 = arith.constant 0 : index
    %0 = vector.load %arg1[%c0, %c0_0, %c0_1] : memref<1x16x32xbf16, #tpu.memory_space<vmem>>, vector<1x16x32xbf16>
    %1 = vector.shape_cast %0 : vector<1x16x32xbf16> to vector<16x32xbf16>
    %2 = arith.extf %1 : vector<16x32xbf16> to vector<16x32xf32>
    %cst = arith.constant dense<0.000000e+00> : vector<32xf32>
    %3 = vector.multi_reduction <add>, %2, %cst [0] : vector<16x32xf32> to vector<32xf32>
    %4 = vector.shape_cast %3 : vector<32xf32> to vector<1x32xf32>
    %cst_2 = arith.constant 6.250000e-02 : f32
    %5 = vector.broadcast %cst_2 : f32 to vector<1x32xf32>
    %6 = arith.mulf %4, %5 : vector<1x32xf32>
    %7 = arith.mulf %2, %2 : vector<16x32xf32>
    %cst_3 = arith.constant dense<0.000000e+00> : vector<32xf32>
    %8 = vector.multi_reduction <add>, %7, %cst_3 [0] : vector<16x32xf32> to vector<32xf32>
    %9 = vector.shape_cast %8 : vector<32xf32> to vector<1x32xf32>
    %cst_4 = arith.constant 6.250000e-02 : f32
    %10 = vector.broadcast %cst_4 : f32 to vector<1x32xf32>
    %11 = arith.mulf %9, %10 : vector<1x32xf32>
    %12 = arith.mulf %6, %6 : vector<1x32xf32>
    %13 = arith.subf %11, %12 : vector<1x32xf32>
    %cst_5 = arith.constant 0.000000e+00 : f32
    %14 = vector.broadcast %cst_5 : f32 to vector<1x32xf32>
    %15 = arith.maximumf %13, %14 : vector<1x32xf32>
    %cst_6 = arith.constant 9.99999974E-6 : f32
    %16 = vector.broadcast %cst_6 : f32 to vector<1x32xf32>
    %17 = arith.addf %15, %16 : vector<1x32xf32>
    %18 = math.rsqrt %17 : vector<1x32xf32>
    %c0_7 = arith.constant 0 : index
    %c0_8 = arith.constant 0 : index
    %c0_9 = arith.constant 0 : index
    %19 = vector.load %arg3[%c0_7, %c0_8, %c0_9] : memref<1x1x32xf32, #tpu.memory_space<vmem>>, vector<1x1x32xf32>
    %20 = vector.shape_cast %19 : vector<1x1x32xf32> to vector<1x32xf32>
    %21 = arith.mulf %18, %20 : vector<1x32xf32>
    %c0_10 = arith.constant 0 : index
    %c0_11 = arith.constant 0 : index
    %c0_12 = arith.constant 0 : index
    %22 = vector.load %arg2[%c0_10, %c0_11, %c0_12] : memref<1x1x32xf32, #tpu.memory_space<vmem>>, vector<1x1x32xf32>
    %23 = vector.shape_cast %22 : vector<1x1x32xf32> to vector<1x32xf32>
    %24 = arith.mulf %6, %21 : vector<1x32xf32>
    %25 = arith.subf %23, %24 : vector<1x32xf32>
    %26 = vector.broadcast %21 : vector<1x32xf32> to vector<16x32xf32>
    %27 = arith.mulf %2, %26 : vector<16x32xf32>
    %28 = vector.broadcast %25 : vector<1x32xf32> to vector<16x32xf32>
    %29 = arith.addf %27, %28 : vector<16x32xf32>
    %cst_13 = arith.constant 0.000000e+00 : f32
    %30 = vector.broadcast %cst_13 : f32 to vector<16x32xf32>
    %31 = arith.cmpf oge, %29, %30 : vector<16x32xf32>
    %cst_14 = arith.constant 0.00999999977 : f32
    %32 = vector.broadcast %cst_14 : f32 to vector<16x32xf32>
    %33 = arith.mulf %32, %29 : vector<16x32xf32>
    %34 = arith.select %31, %29, %33 : vector<16x32xi1>, vector<16x32xf32>
    %35 = vector.extract_strided_slice %34 {offsets = [1, 0], sizes = [1, 32], strides = [1, 1]} : vector<16x32xf32> to vector<1x32xf32>
    %36 = vector.extract_strided_slice %34 {offsets = [14, 0], sizes = [1, 32], strides = [1, 1]} : vector<16x32xf32> to vector<1x32xf32>
    %37 = tpu.concatenate %35, %34, %36 in 0 : vector<1x32xf32>, vector<16x32xf32>, vector<1x32xf32> -> vector<18x32xf32>
    %38 = vector.extract_strided_slice %37 {offsets = [0, 0], sizes = [16, 32], strides = [1, 1]} : vector<18x32xf32> to vector<16x32xf32>
    %39 = arith.truncf %38 : vector<16x32xf32> to vector<16x32xbf16>
    %c0_15 = arith.constant 0 : index
    %c0_16 = arith.constant 0 : index
    %c0_17 = arith.constant 0 : index
    %40 = vector.load %arg4[%c0_15, %c0_16, %c0_17] : memref<3x32x32xbf16, #tpu.memory_space<vmem>>, vector<1x32x32xbf16>
    %41 = vector.shape_cast %40 : vector<1x32x32xbf16> to vector<32x32xbf16>
    %cst_18 = arith.constant dense<0.000000e+00> : vector<16x32xf32>
    %42 = tpu.matmul %39, %41, %cst_18 {dimension_numbers = #tpu.dot_dimension_numbers<[1], [0], [0], [1], [0, 0, 1, 1], [], []>} : vector<16x32xbf16>, vector<32x32xbf16>, vector<16x32xf32> -> vector<16x32xf32>
    %43 = vector.extract_strided_slice %37 {offsets = [1, 0], sizes = [16, 32], strides = [1, 1]} : vector<18x32xf32> to vector<16x32xf32>
    %44 = arith.truncf %43 : vector<16x32xf32> to vector<16x32xbf16>
    %c1 = arith.constant 1 : index
    %c0_19 = arith.constant 0 : index
    %c0_20 = arith.constant 0 : index
    %45 = vector.load %arg4[%c1, %c0_19, %c0_20] : memref<3x32x32xbf16, #tpu.memory_space<vmem>>, vector<1x32x32xbf16>
    %46 = vector.shape_cast %45 : vector<1x32x32xbf16> to vector<32x32xbf16>
    %cst_21 = arith.constant dense<0.000000e+00> : vector<16x32xf32>
    %47 = tpu.matmul %44, %46, %cst_21 {dimension_numbers = #tpu.dot_dimension_numbers<[1], [0], [0], [1], [0, 0, 1, 1], [], []>} : vector<16x32xbf16>, vector<32x32xbf16>, vector<16x32xf32> -> vector<16x32xf32>
    %48 = arith.addf %42, %47 : vector<16x32xf32>
    %49 = vector.extract_strided_slice %37 {offsets = [2, 0], sizes = [16, 32], strides = [1, 1]} : vector<18x32xf32> to vector<16x32xf32>
    %50 = arith.truncf %49 : vector<16x32xf32> to vector<16x32xbf16>
    %c2 = arith.constant 2 : index
    %c0_22 = arith.constant 0 : index
    %c0_23 = arith.constant 0 : index
    %51 = vector.load %arg4[%c2, %c0_22, %c0_23] : memref<3x32x32xbf16, #tpu.memory_space<vmem>>, vector<1x32x32xbf16>
    %52 = vector.shape_cast %51 : vector<1x32x32xbf16> to vector<32x32xbf16>
    %cst_24 = arith.constant dense<0.000000e+00> : vector<16x32xf32>
    %53 = tpu.matmul %50, %52, %cst_24 {dimension_numbers = #tpu.dot_dimension_numbers<[1], [0], [0], [1], [0, 0, 1, 1], [], []>} : vector<16x32xbf16>, vector<32x32xbf16>, vector<16x32xf32> -> vector<16x32xf32>
    %54 = arith.addf %48, %53 : vector<16x32xf32>
    %c0_25 = arith.constant 0 : index
    %c0_26 = arith.constant 0 : index
    %55 = vector.load %arg5[%c0_25, %c0_26] : memref<1x32xf32, #tpu.memory_space<vmem>>, vector<1x32xf32>
    %56 = vector.broadcast %55 : vector<1x32xf32> to vector<16x32xf32>
    %57 = arith.addf %54, %56 : vector<16x32xf32>
    %58 = arith.truncf %57 : vector<16x32xf32> to vector<16x32xbf16>
    %c0_27 = arith.constant 0 : index
    %c0_28 = arith.constant 0 : index
    %c0_29 = arith.constant 0 : index
    %59 = vector.load %arg6[%c0_27, %c0_28, %c0_29] : memref<1x16x32xbf16, #tpu.memory_space<vmem>>, vector<1x16x32xbf16>
    %60 = vector.shape_cast %59 : vector<1x16x32xbf16> to vector<16x32xbf16>
    %61 = vector.shape_cast %58 : vector<16x32xbf16> to vector<1x16x32xbf16>
    tpu.vector_store %arg6[%c0_27, %c0_28, %c0_29], %61 {strides = array<i32>} : memref<1x16x32xbf16, #tpu.memory_space<vmem>>, vector<1x16x32xbf16>,
    return
  }
  func.func @transform_0(%arg0: i32) -> (i32, i32, i32) {
    %c0_i32 = arith.constant 0 : i32
    %c0_i32_0 = arith.constant 0 : i32
    %c0_i32_1 = arith.constant 0 : i32
    return %arg0, %c0_i32, %c0_i32_0 : i32, i32, i32
  }
  func.func @transform_1(%arg0: i32) -> (i32, i32, i32) {
    %c0_i32 = arith.constant 0 : i32
    %c0_i32_0 = arith.constant 0 : i32
    %c0_i32_1 = arith.constant 0 : i32
    return %arg0, %c0_i32, %c0_i32_0 : i32, i32, i32
  }
  func.func @transform_2(%arg0: i32) -> (i32, i32, i32) {
    %c0_i32 = arith.constant 0 : i32
    %c0_i32_0 = arith.constant 0 : i32
    %c0_i32_1 = arith.constant 0 : i32
    return %arg0, %c0_i32, %c0_i32_0 : i32, i32, i32
  }
  func.func @transform_3(%arg0: i32) -> (i32, i32, i32) {
    %c0_i32 = arith.constant 0 : i32
    %c0_i32_0 = arith.constant 0 : i32
    %c0_i32_1 = arith.constant 0 : i32
    %c0_i32_2 = arith.constant 0 : i32
    return %c0_i32, %c0_i32_0, %c0_i32_1 : i32, i32, i32
  }
  func.func @transform_4(%arg0: i32) -> (i32, i32) {
    %c0_i32 = arith.constant 0 : i32
    %c0_i32_0 = arith.constant 0 : i32
    %c0_i32_1 = arith.constant 0 : i32
    return %c0_i32, %c0_i32_0 : i32, i32
  }
  func.func @transform_5(%arg0: i32) -> (i32, i32, i32) {
    %c0_i32 = arith.constant 0 : i32
    %c0_i32_0 = arith.constant 0 : i32
    %c0_i32_1 = arith.constant 0 : i32
    return %arg0, %c0_i32, %c0_i32_0 : i32, i32, i32
  }
}

module attributes {stable_mosaic.version = 11 : i64} {
  func.func @kernel(%arg0: i32, %arg1: memref<1x16x32xbf16, #tpu.memory_space<vmem>>, %arg2: memref<1x8x32xbf16, #tpu.memory_space<vmem>>, %arg3: memref<1x1x32xf32, #tpu.memory_space<vmem>>, %arg4: memref<1x1x32xf32, #tpu.memory_space<vmem>>, %arg5: memref<3x32x32xbf16, #tpu.memory_space<vmem>>, %arg6: memref<1x32xf32, #tpu.memory_space<vmem>>, %arg7: memref<1x16x32xbf16, #tpu.memory_space<vmem>>, %arg8: memref<1x16x32xbf16, #tpu.memory_space<vmem>>) attributes {dimension_semantics = [#tpu.dimension_semantics<parallel>], iteration_bounds = array<i64: 2>, scalar_prefetch = 0 : i64, scratch_operands = 0 : i64, tpu.core_type = #tpu.core_type<tc>, window_params = [{transform_indices = @transform_0, window_bounds = array<i64: 1, 16, 32>}, {transform_indices = @transform_1, window_bounds = array<i64: 1, 8, 32>}, {transform_indices = @transform_2, window_bounds = array<i64: 1, 1, 32>}, {transform_indices = @transform_3, window_bounds = array<i64: 1, 1, 32>}, {pipeline_mode = #tpu.pipeline_mode<synchronous>, transform_indices = @transform_4, window_bounds = array<i64: 3, 32, 32>}, {pipeline_mode = #tpu.pipeline_mode<synchronous>, transform_indices = @transform_5, window_bounds = array<i64: 1, 32>}, {transform_indices = @transform_6, window_bounds = array<i64: 1, 16, 32>}, {transform_indices = @transform_7, window_bounds = array<i64: 1, 16, 32>}]} {
    %c0 = arith.constant 0 : index
    %c0_0 = arith.constant 0 : index
    %c0_1 = arith.constant 0 : index
    %0 = vector.load %arg1[%c0, %c0_0, %c0_1] : memref<1x16x32xbf16, #tpu.memory_space<vmem>>, vector<1x16x32xbf16>
    %1 = vector.shape_cast %0 : vector<1x16x32xbf16> to vector<16x32xbf16>
    %2 = arith.extf %1 : vector<16x32xbf16> to vector<16x32xf32>
    %cst = arith.constant dense<0.000000e+00> : vector<32xf32>
    %3 = vector.multi_reduction <add>, %2, %cst [0] : vector<16x32xf32> to vector<32xf32>
    %4 = vector.shape_cast %3 : vector<32xf32> to vector<1x32xf32>
    %cst_2 = arith.constant 6.250000e-02 : f32
    %5 = vector.broadcast %cst_2 : f32 to vector<1x32xf32>
    %6 = arith.mulf %4, %5 : vector<1x32xf32>
    %7 = arith.mulf %2, %2 : vector<16x32xf32>
    %cst_3 = arith.constant dense<0.000000e+00> : vector<32xf32>
    %8 = vector.multi_reduction <add>, %7, %cst_3 [0] : vector<16x32xf32> to vector<32xf32>
    %9 = vector.shape_cast %8 : vector<32xf32> to vector<1x32xf32>
    %cst_4 = arith.constant 6.250000e-02 : f32
    %10 = vector.broadcast %cst_4 : f32 to vector<1x32xf32>
    %11 = arith.mulf %9, %10 : vector<1x32xf32>
    %12 = arith.mulf %6, %6 : vector<1x32xf32>
    %13 = arith.subf %11, %12 : vector<1x32xf32>
    %cst_5 = arith.constant 0.000000e+00 : f32
    %14 = vector.broadcast %cst_5 : f32 to vector<1x32xf32>
    %15 = arith.maximumf %13, %14 : vector<1x32xf32>
    %cst_6 = arith.constant 9.99999974E-6 : f32
    %16 = vector.broadcast %cst_6 : f32 to vector<1x32xf32>
    %17 = arith.addf %15, %16 : vector<1x32xf32>
    %18 = math.rsqrt %17 : vector<1x32xf32>
    %c0_7 = arith.constant 0 : index
    %c0_8 = arith.constant 0 : index
    %c0_9 = arith.constant 0 : index
    %19 = vector.load %arg4[%c0_7, %c0_8, %c0_9] : memref<1x1x32xf32, #tpu.memory_space<vmem>>, vector<1x1x32xf32>
    %20 = vector.shape_cast %19 : vector<1x1x32xf32> to vector<1x32xf32>
    %21 = arith.mulf %18, %20 : vector<1x32xf32>
    %c0_10 = arith.constant 0 : index
    %c0_11 = arith.constant 0 : index
    %c0_12 = arith.constant 0 : index
    %22 = vector.load %arg3[%c0_10, %c0_11, %c0_12] : memref<1x1x32xf32, #tpu.memory_space<vmem>>, vector<1x1x32xf32>
    %23 = vector.shape_cast %22 : vector<1x1x32xf32> to vector<1x32xf32>
    %24 = arith.mulf %6, %21 : vector<1x32xf32>
    %25 = arith.subf %23, %24 : vector<1x32xf32>
    %26 = vector.broadcast %21 : vector<1x32xf32> to vector<16x32xf32>
    %27 = arith.mulf %2, %26 : vector<16x32xf32>
    %28 = vector.broadcast %25 : vector<1x32xf32> to vector<16x32xf32>
    %29 = arith.addf %27, %28 : vector<16x32xf32>
    %cst_13 = arith.constant 0.000000e+00 : f32
    %30 = vector.broadcast %cst_13 : f32 to vector<16x32xf32>
    %31 = arith.cmpf oge, %29, %30 : vector<16x32xf32>
    %cst_14 = arith.constant 0.00999999977 : f32
    %32 = vector.broadcast %cst_14 : f32 to vector<16x32xf32>
    %33 = arith.mulf %32, %29 : vector<16x32xf32>
    %34 = arith.select %31, %29, %33 : vector<16x32xi1>, vector<16x32xf32>
    %c0_15 = arith.constant 0 : index
    %c0_16 = arith.constant 0 : index
    %c0_17 = arith.constant 0 : index
    %35 = vector.load %arg2[%c0_15, %c0_16, %c0_17] : memref<1x8x32xbf16, #tpu.memory_space<vmem>>, vector<1x8x32xbf16>
    %36 = vector.shape_cast %35 : vector<1x8x32xbf16> to vector<8x32xbf16>
    %37 = arith.extf %36 : vector<8x32xbf16> to vector<8x32xf32>
    %38 = vector.shape_cast %37 : vector<8x32xf32> to vector<8x1x32xf32>
    %39 = vector.shape_cast %38 : vector<8x1x32xf32> to vector<8x1x32xf32>
    %40 = vector.broadcast %39 : vector<8x1x32xf32> to vector<8x2x32xf32>
    %41 = vector.shape_cast %40 : vector<8x2x32xf32> to vector<16x32xf32>
    %42 = arith.addf %34, %41 : vector<16x32xf32>
    %43 = arith.truncf %42 : vector<16x32xf32> to vector<16x32xbf16>
    %c0_18 = arith.constant 0 : index
    %c0_19 = arith.constant 0 : index
    %c0_20 = arith.constant 0 : index
    %44 = vector.load %arg8[%c0_18, %c0_19, %c0_20] : memref<1x16x32xbf16, #tpu.memory_space<vmem>>, vector<1x16x32xbf16>
    %45 = vector.shape_cast %44 : vector<1x16x32xbf16> to vector<16x32xbf16>
    %46 = vector.shape_cast %43 : vector<16x32xbf16> to vector<1x16x32xbf16>
    tpu.vector_store %arg8[%c0_18, %c0_19, %c0_20], %46 {strides = array<i32>} : memref<1x16x32xbf16, #tpu.memory_space<vmem>>, vector<1x16x32xbf16>,
    %47 = vector.extract_strided_slice %42 {offsets = [1, 0], sizes = [1, 32], strides = [1, 1]} : vector<16x32xf32> to vector<1x32xf32>
    %48 = vector.extract_strided_slice %42 {offsets = [14, 0], sizes = [1, 32], strides = [1, 1]} : vector<16x32xf32> to vector<1x32xf32>
    %49 = tpu.concatenate %47, %42, %48 in 0 : vector<1x32xf32>, vector<16x32xf32>, vector<1x32xf32> -> vector<18x32xf32>
    %50 = vector.extract_strided_slice %49 {offsets = [0, 0], sizes = [16, 32], strides = [1, 1]} : vector<18x32xf32> to vector<16x32xf32>
    %51 = arith.truncf %50 : vector<16x32xf32> to vector<16x32xbf16>
    %c0_21 = arith.constant 0 : index
    %c0_22 = arith.constant 0 : index
    %c0_23 = arith.constant 0 : index
    %52 = vector.load %arg5[%c0_21, %c0_22, %c0_23] : memref<3x32x32xbf16, #tpu.memory_space<vmem>>, vector<1x32x32xbf16>
    %53 = vector.shape_cast %52 : vector<1x32x32xbf16> to vector<32x32xbf16>
    %cst_24 = arith.constant dense<0.000000e+00> : vector<16x32xf32>
    %54 = tpu.matmul %51, %53, %cst_24 {dimension_numbers = #tpu.dot_dimension_numbers<[1], [0], [0], [1], [0, 0, 1, 1], [], []>} : vector<16x32xbf16>, vector<32x32xbf16>, vector<16x32xf32> -> vector<16x32xf32>
    %55 = vector.extract_strided_slice %49 {offsets = [1, 0], sizes = [16, 32], strides = [1, 1]} : vector<18x32xf32> to vector<16x32xf32>
    %56 = arith.truncf %55 : vector<16x32xf32> to vector<16x32xbf16>
    %c1 = arith.constant 1 : index
    %c0_25 = arith.constant 0 : index
    %c0_26 = arith.constant 0 : index
    %57 = vector.load %arg5[%c1, %c0_25, %c0_26] : memref<3x32x32xbf16, #tpu.memory_space<vmem>>, vector<1x32x32xbf16>
    %58 = vector.shape_cast %57 : vector<1x32x32xbf16> to vector<32x32xbf16>
    %cst_27 = arith.constant dense<0.000000e+00> : vector<16x32xf32>
    %59 = tpu.matmul %56, %58, %cst_27 {dimension_numbers = #tpu.dot_dimension_numbers<[1], [0], [0], [1], [0, 0, 1, 1], [], []>} : vector<16x32xbf16>, vector<32x32xbf16>, vector<16x32xf32> -> vector<16x32xf32>
    %60 = arith.addf %54, %59 : vector<16x32xf32>
    %61 = vector.extract_strided_slice %49 {offsets = [2, 0], sizes = [16, 32], strides = [1, 1]} : vector<18x32xf32> to vector<16x32xf32>
    %62 = arith.truncf %61 : vector<16x32xf32> to vector<16x32xbf16>
    %c2 = arith.constant 2 : index
    %c0_28 = arith.constant 0 : index
    %c0_29 = arith.constant 0 : index
    %63 = vector.load %arg5[%c2, %c0_28, %c0_29] : memref<3x32x32xbf16, #tpu.memory_space<vmem>>, vector<1x32x32xbf16>
    %64 = vector.shape_cast %63 : vector<1x32x32xbf16> to vector<32x32xbf16>
    %cst_30 = arith.constant dense<0.000000e+00> : vector<16x32xf32>
    %65 = tpu.matmul %62, %64, %cst_30 {dimension_numbers = #tpu.dot_dimension_numbers<[1], [0], [0], [1], [0, 0, 1, 1], [], []>} : vector<16x32xbf16>, vector<32x32xbf16>, vector<16x32xf32> -> vector<16x32xf32>
    %66 = arith.addf %60, %65 : vector<16x32xf32>
    %c0_31 = arith.constant 0 : index
    %c0_32 = arith.constant 0 : index
    %67 = vector.load %arg6[%c0_31, %c0_32] : memref<1x32xf32, #tpu.memory_space<vmem>>, vector<1x32xf32>
    %68 = vector.broadcast %67 : vector<1x32xf32> to vector<16x32xf32>
    %69 = arith.addf %66, %68 : vector<16x32xf32>
    %70 = arith.truncf %69 : vector<16x32xf32> to vector<16x32xbf16>
    %c0_33 = arith.constant 0 : index
    %c0_34 = arith.constant 0 : index
    %c0_35 = arith.constant 0 : index
    %71 = vector.load %arg7[%c0_33, %c0_34, %c0_35] : memref<1x16x32xbf16, #tpu.memory_space<vmem>>, vector<1x16x32xbf16>
    %72 = vector.shape_cast %71 : vector<1x16x32xbf16> to vector<16x32xbf16>
    %73 = vector.shape_cast %70 : vector<16x32xbf16> to vector<1x16x32xbf16>
    tpu.vector_store %arg7[%c0_33, %c0_34, %c0_35], %73 {strides = array<i32>} : memref<1x16x32xbf16, #tpu.memory_space<vmem>>, vector<1x16x32xbf16>,
    return
  }
  func.func @transform_0(%arg0: i32) -> (i32, i32, i32) {
    %c0_i32 = arith.constant 0 : i32
    %c0_i32_0 = arith.constant 0 : i32
    %c0_i32_1 = arith.constant 0 : i32
    return %arg0, %c0_i32, %c0_i32_0 : i32, i32, i32
  }
  func.func @transform_1(%arg0: i32) -> (i32, i32, i32) {
    %c0_i32 = arith.constant 0 : i32
    %c0_i32_0 = arith.constant 0 : i32
    %c0_i32_1 = arith.constant 0 : i32
    return %arg0, %c0_i32, %c0_i32_0 : i32, i32, i32
  }
  func.func @transform_2(%arg0: i32) -> (i32, i32, i32) {
    %c0_i32 = arith.constant 0 : i32
    %c0_i32_0 = arith.constant 0 : i32
    %c0_i32_1 = arith.constant 0 : i32
    return %arg0, %c0_i32, %c0_i32_0 : i32, i32, i32
  }
  func.func @transform_3(%arg0: i32) -> (i32, i32, i32) {
    %c0_i32 = arith.constant 0 : i32
    %c0_i32_0 = arith.constant 0 : i32
    %c0_i32_1 = arith.constant 0 : i32
    return %arg0, %c0_i32, %c0_i32_0 : i32, i32, i32
  }
  func.func @transform_4(%arg0: i32) -> (i32, i32, i32) {
    %c0_i32 = arith.constant 0 : i32
    %c0_i32_0 = arith.constant 0 : i32
    %c0_i32_1 = arith.constant 0 : i32
    %c0_i32_2 = arith.constant 0 : i32
    return %c0_i32, %c0_i32_0, %c0_i32_1 : i32, i32, i32
  }
  func.func @transform_5(%arg0: i32) -> (i32, i32) {
    %c0_i32 = arith.constant 0 : i32
    %c0_i32_0 = arith.constant 0 : i32
    %c0_i32_1 = arith.constant 0 : i32
    return %c0_i32, %c0_i32_0 : i32, i32
  }
  func.func @transform_6(%arg0: i32) -> (i32, i32, i32) {
    %c0_i32 = arith.constant 0 : i32
    %c0_i32_0 = arith.constant 0 : i32
    %c0_i32_1 = arith.constant 0 : i32
    return %arg0, %c0_i32, %c0_i32_0 : i32, i32, i32
  }
  func.func @transform_7(%arg0: i32) -> (i32, i32, i32) {
    %c0_i32 = arith.constant 0 : i32
    %c0_i32_0 = arith.constant 0 : i32
    %c0_i32_1 = arith.constant 0 : i32
    return %arg0, %c0_i32, %c0_i32_0 : i32, i32, i32
  }
}

module attributes {stable_mosaic.version = 11 : i64} {
  func.func @kernel(%arg0: i32, %arg1: memref<1x8x32xbf16, #tpu.memory_space<vmem>>, %arg2: memref<1x1x32xf32, #tpu.memory_space<vmem>>, %arg3: memref<1x1x32xf32, #tpu.memory_space<vmem>>, %arg4: memref<3x32x64xbf16, #tpu.memory_space<vmem>>, %arg5: memref<1x64xf32, #tpu.memory_space<vmem>>, %arg6: memref<1x8x64xbf16, #tpu.memory_space<vmem>>) attributes {dimension_semantics = [#tpu.dimension_semantics<parallel>], iteration_bounds = array<i64: 2>, scalar_prefetch = 0 : i64, scratch_operands = 0 : i64, tpu.core_type = #tpu.core_type<tc>, window_params = [{transform_indices = @transform_0, window_bounds = array<i64: 1, 8, 32>}, {transform_indices = @transform_1, window_bounds = array<i64: 1, 1, 32>}, {transform_indices = @transform_2, window_bounds = array<i64: 1, 1, 32>}, {pipeline_mode = #tpu.pipeline_mode<synchronous>, transform_indices = @transform_3, window_bounds = array<i64: 3, 32, 64>}, {pipeline_mode = #tpu.pipeline_mode<synchronous>, transform_indices = @transform_4, window_bounds = array<i64: 1, 64>}, {transform_indices = @transform_5, window_bounds = array<i64: 1, 8, 64>}]} {
    %c0 = arith.constant 0 : index
    %c0_0 = arith.constant 0 : index
    %c0_1 = arith.constant 0 : index
    %0 = vector.load %arg1[%c0, %c0_0, %c0_1] : memref<1x8x32xbf16, #tpu.memory_space<vmem>>, vector<1x8x32xbf16>
    %1 = vector.shape_cast %0 : vector<1x8x32xbf16> to vector<8x32xbf16>
    %2 = arith.extf %1 : vector<8x32xbf16> to vector<8x32xf32>
    %cst = arith.constant dense<0.000000e+00> : vector<32xf32>
    %3 = vector.multi_reduction <add>, %2, %cst [0] : vector<8x32xf32> to vector<32xf32>
    %4 = vector.shape_cast %3 : vector<32xf32> to vector<1x32xf32>
    %cst_2 = arith.constant 1.250000e-01 : f32
    %5 = vector.broadcast %cst_2 : f32 to vector<1x32xf32>
    %6 = arith.mulf %4, %5 : vector<1x32xf32>
    %7 = arith.mulf %2, %2 : vector<8x32xf32>
    %cst_3 = arith.constant dense<0.000000e+00> : vector<32xf32>
    %8 = vector.multi_reduction <add>, %7, %cst_3 [0] : vector<8x32xf32> to vector<32xf32>
    %9 = vector.shape_cast %8 : vector<32xf32> to vector<1x32xf32>
    %cst_4 = arith.constant 1.250000e-01 : f32
    %10 = vector.broadcast %cst_4 : f32 to vector<1x32xf32>
    %11 = arith.mulf %9, %10 : vector<1x32xf32>
    %12 = arith.mulf %6, %6 : vector<1x32xf32>
    %13 = arith.subf %11, %12 : vector<1x32xf32>
    %cst_5 = arith.constant 0.000000e+00 : f32
    %14 = vector.broadcast %cst_5 : f32 to vector<1x32xf32>
    %15 = arith.maximumf %13, %14 : vector<1x32xf32>
    %cst_6 = arith.constant 9.99999974E-6 : f32
    %16 = vector.broadcast %cst_6 : f32 to vector<1x32xf32>
    %17 = arith.addf %15, %16 : vector<1x32xf32>
    %18 = math.rsqrt %17 : vector<1x32xf32>
    %c0_7 = arith.constant 0 : index
    %c0_8 = arith.constant 0 : index
    %c0_9 = arith.constant 0 : index
    %19 = vector.load %arg3[%c0_7, %c0_8, %c0_9] : memref<1x1x32xf32, #tpu.memory_space<vmem>>, vector<1x1x32xf32>
    %20 = vector.shape_cast %19 : vector<1x1x32xf32> to vector<1x32xf32>
    %21 = arith.mulf %18, %20 : vector<1x32xf32>
    %c0_10 = arith.constant 0 : index
    %c0_11 = arith.constant 0 : index
    %c0_12 = arith.constant 0 : index
    %22 = vector.load %arg2[%c0_10, %c0_11, %c0_12] : memref<1x1x32xf32, #tpu.memory_space<vmem>>, vector<1x1x32xf32>
    %23 = vector.shape_cast %22 : vector<1x1x32xf32> to vector<1x32xf32>
    %24 = arith.mulf %6, %21 : vector<1x32xf32>
    %25 = arith.subf %23, %24 : vector<1x32xf32>
    %26 = vector.broadcast %21 : vector<1x32xf32> to vector<8x32xf32>
    %27 = arith.mulf %2, %26 : vector<8x32xf32>
    %28 = vector.broadcast %25 : vector<1x32xf32> to vector<8x32xf32>
    %29 = arith.addf %27, %28 : vector<8x32xf32>
    %cst_13 = arith.constant 0.000000e+00 : f32
    %30 = vector.broadcast %cst_13 : f32 to vector<8x32xf32>
    %31 = arith.cmpf oge, %29, %30 : vector<8x32xf32>
    %cst_14 = arith.constant 0.00999999977 : f32
    %32 = vector.broadcast %cst_14 : f32 to vector<8x32xf32>
    %33 = arith.mulf %32, %29 : vector<8x32xf32>
    %34 = arith.select %31, %29, %33 : vector<8x32xi1>, vector<8x32xf32>
    %35 = vector.extract_strided_slice %34 {offsets = [1, 0], sizes = [1, 32], strides = [1, 1]} : vector<8x32xf32> to vector<1x32xf32>
    %36 = vector.extract_strided_slice %34 {offsets = [6, 0], sizes = [1, 32], strides = [1, 1]} : vector<8x32xf32> to vector<1x32xf32>
    %37 = tpu.concatenate %35, %34, %36 in 0 : vector<1x32xf32>, vector<8x32xf32>, vector<1x32xf32> -> vector<10x32xf32>
    %38 = vector.extract_strided_slice %37 {offsets = [0, 0], sizes = [8, 32], strides = [1, 1]} : vector<10x32xf32> to vector<8x32xf32>
    %39 = arith.truncf %38 : vector<8x32xf32> to vector<8x32xbf16>
    %c0_15 = arith.constant 0 : index
    %c0_16 = arith.constant 0 : index
    %c0_17 = arith.constant 0 : index
    %40 = vector.load %arg4[%c0_15, %c0_16, %c0_17] : memref<3x32x64xbf16, #tpu.memory_space<vmem>>, vector<1x32x64xbf16>
    %41 = vector.shape_cast %40 : vector<1x32x64xbf16> to vector<32x64xbf16>
    %cst_18 = arith.constant dense<0.000000e+00> : vector<8x64xf32>
    %42 = tpu.matmul %39, %41, %cst_18 {dimension_numbers = #tpu.dot_dimension_numbers<[1], [0], [0], [1], [0, 0, 1, 1], [], []>} : vector<8x32xbf16>, vector<32x64xbf16>, vector<8x64xf32> -> vector<8x64xf32>
    %43 = vector.extract_strided_slice %37 {offsets = [1, 0], sizes = [8, 32], strides = [1, 1]} : vector<10x32xf32> to vector<8x32xf32>
    %44 = arith.truncf %43 : vector<8x32xf32> to vector<8x32xbf16>
    %c1 = arith.constant 1 : index
    %c0_19 = arith.constant 0 : index
    %c0_20 = arith.constant 0 : index
    %45 = vector.load %arg4[%c1, %c0_19, %c0_20] : memref<3x32x64xbf16, #tpu.memory_space<vmem>>, vector<1x32x64xbf16>
    %46 = vector.shape_cast %45 : vector<1x32x64xbf16> to vector<32x64xbf16>
    %cst_21 = arith.constant dense<0.000000e+00> : vector<8x64xf32>
    %47 = tpu.matmul %44, %46, %cst_21 {dimension_numbers = #tpu.dot_dimension_numbers<[1], [0], [0], [1], [0, 0, 1, 1], [], []>} : vector<8x32xbf16>, vector<32x64xbf16>, vector<8x64xf32> -> vector<8x64xf32>
    %48 = arith.addf %42, %47 : vector<8x64xf32>
    %49 = vector.extract_strided_slice %37 {offsets = [2, 0], sizes = [8, 32], strides = [1, 1]} : vector<10x32xf32> to vector<8x32xf32>
    %50 = arith.truncf %49 : vector<8x32xf32> to vector<8x32xbf16>
    %c2 = arith.constant 2 : index
    %c0_22 = arith.constant 0 : index
    %c0_23 = arith.constant 0 : index
    %51 = vector.load %arg4[%c2, %c0_22, %c0_23] : memref<3x32x64xbf16, #tpu.memory_space<vmem>>, vector<1x32x64xbf16>
    %52 = vector.shape_cast %51 : vector<1x32x64xbf16> to vector<32x64xbf16>
    %cst_24 = arith.constant dense<0.000000e+00> : vector<8x64xf32>
    %53 = tpu.matmul %50, %52, %cst_24 {dimension_numbers = #tpu.dot_dimension_numbers<[1], [0], [0], [1], [0, 0, 1, 1], [], []>} : vector<8x32xbf16>, vector<32x64xbf16>, vector<8x64xf32> -> vector<8x64xf32>
    %54 = arith.addf %48, %53 : vector<8x64xf32>
    %c0_25 = arith.constant 0 : index
    %c0_26 = arith.constant 0 : index
    %55 = vector.load %arg5[%c0_25, %c0_26] : memref<1x64xf32, #tpu.memory_space<vmem>>, vector<1x64xf32>
    %56 = vector.broadcast %55 : vector<1x64xf32> to vector<8x64xf32>
    %57 = arith.addf %54, %56 : vector<8x64xf32>
    %58 = arith.truncf %57 : vector<8x64xf32> to vector<8x64xbf16>
    %c0_27 = arith.constant 0 : index
    %c0_28 = arith.constant 0 : index
    %c0_29 = arith.constant 0 : index
    %59 = vector.load %arg6[%c0_27, %c0_28, %c0_29] : memref<1x8x64xbf16, #tpu.memory_space<vmem>>, vector<1x8x64xbf16>
    %60 = vector.shape_cast %59 : vector<1x8x64xbf16> to vector<8x64xbf16>
    %61 = vector.shape_cast %58 : vector<8x64xbf16> to vector<1x8x64xbf16>
    tpu.vector_store %arg6[%c0_27, %c0_28, %c0_29], %61 {strides = array<i32>} : memref<1x8x64xbf16, #tpu.memory_space<vmem>>, vector<1x8x64xbf16>,
    return
  }
  func.func @transform_0(%arg0: i32) -> (i32, i32, i32) {
    %c0_i32 = arith.constant 0 : i32
    %c0_i32_0 = arith.constant 0 : i32
    %c0_i32_1 = arith.constant 0 : i32
    return %arg0, %c0_i32, %c0_i32_0 : i32, i32, i32
  }
  func.func @transform_1(%arg0: i32) -> (i32, i32, i32) {
    %c0_i32 = arith.constant 0 : i32
    %c0_i32_0 = arith.constant 0 : i32
    %c0_i32_1 = arith.constant 0 : i32
    return %arg0, %c0_i32, %c0_i32_0 : i32, i32, i32
  }
  func.func @transform_2(%arg0: i32) -> (i32, i32, i32) {
    %c0_i32 = arith.constant 0 : i32
    %c0_i32_0 = arith.constant 0 : i32
    %c0_i32_1 = arith.constant 0 : i32
    return %arg0, %c0_i32, %c0_i32_0 : i32, i32, i32
  }
  func.func @transform_3(%arg0: i32) -> (i32, i32, i32) {
    %c0_i32 = arith.constant 0 : i32
    %c0_i32_0 = arith.constant 0 : i32
    %c0_i32_1 = arith.constant 0 : i32
    %c0_i32_2 = arith.constant 0 : i32
    return %c0_i32, %c0_i32_0, %c0_i32_1 : i32, i32, i32
  }
  func.func @transform_4(%arg0: i32) -> (i32, i32) {
    %c0_i32 = arith.constant 0 : i32
    %c0_i32_0 = arith.constant 0 : i32
    %c0_i32_1 = arith.constant 0 : i32
    return %c0_i32, %c0_i32_0 : i32, i32
  }
  func.func @transform_5(%arg0: i32) -> (i32, i32, i32) {
    %c0_i32 = arith.constant 0 : i32
    %c0_i32_0 = arith.constant 0 : i32
    %c0_i32_1 = arith.constant 0 : i32
    return %arg0, %c0_i32, %c0_i32_0 : i32, i32, i32
  }
}

module attributes {stable_mosaic.version = 11 : i64} {
  func.func @kernel(%arg0: i32, %arg1: memref<1x16x32xbf16, #tpu.memory_space<vmem>>, %arg2: memref<1x16x32xbf16, #tpu.memory_space<vmem>>, %arg3: memref<1x1x32xf32, #tpu.memory_space<vmem>>, %arg4: memref<1x1x32xf32, #tpu.memory_space<vmem>>, %arg5: memref<1x4x32xbf16, #tpu.memory_space<vmem>>, %arg6: memref<4x1xf32, #tpu.memory_space<vmem>>, %arg7: memref<1x4x16xf32, #tpu.memory_space<vmem>>) attributes {dimension_semantics = [#tpu.dimension_semantics<parallel>], iteration_bounds = array<i64: 2>, scalar_prefetch = 0 : i64, scratch_operands = 0 : i64, tpu.core_type = #tpu.core_type<tc>, window_params = [{transform_indices = @transform_0, window_bounds = array<i64: 1, 16, 32>}, {transform_indices = @transform_1, window_bounds = array<i64: 1, 16, 32>}, {transform_indices = @transform_2, window_bounds = array<i64: 1, 1, 32>}, {transform_indices = @transform_3, window_bounds = array<i64: 1, 1, 32>}, {pipeline_mode = #tpu.pipeline_mode<synchronous>, transform_indices = @transform_4, window_bounds = array<i64: 1, 4, 32>}, {pipeline_mode = #tpu.pipeline_mode<synchronous>, transform_indices = @transform_5, window_bounds = array<i64: 4, 1>}, {transform_indices = @transform_6, window_bounds = array<i64: 1, 4, 16>}]} {
    %c0 = arith.constant 0 : index
    %c0_0 = arith.constant 0 : index
    %c0_1 = arith.constant 0 : index
    %0 = vector.load %arg1[%c0, %c0_0, %c0_1] : memref<1x16x32xbf16, #tpu.memory_space<vmem>>, vector<1x16x32xbf16>
    %1 = vector.shape_cast %0 : vector<1x16x32xbf16> to vector<16x32xbf16>
    %2 = arith.extf %1 : vector<16x32xbf16> to vector<16x32xf32>
    %cst = arith.constant dense<0.000000e+00> : vector<32xf32>
    %3 = vector.multi_reduction <add>, %2, %cst [0] : vector<16x32xf32> to vector<32xf32>
    %4 = vector.shape_cast %3 : vector<32xf32> to vector<1x32xf32>
    %cst_2 = arith.constant 6.250000e-02 : f32
    %5 = vector.broadcast %cst_2 : f32 to vector<1x32xf32>
    %6 = arith.mulf %4, %5 : vector<1x32xf32>
    %7 = arith.mulf %2, %2 : vector<16x32xf32>
    %cst_3 = arith.constant dense<0.000000e+00> : vector<32xf32>
    %8 = vector.multi_reduction <add>, %7, %cst_3 [0] : vector<16x32xf32> to vector<32xf32>
    %9 = vector.shape_cast %8 : vector<32xf32> to vector<1x32xf32>
    %cst_4 = arith.constant 6.250000e-02 : f32
    %10 = vector.broadcast %cst_4 : f32 to vector<1x32xf32>
    %11 = arith.mulf %9, %10 : vector<1x32xf32>
    %12 = arith.mulf %6, %6 : vector<1x32xf32>
    %13 = arith.subf %11, %12 : vector<1x32xf32>
    %cst_5 = arith.constant 0.000000e+00 : f32
    %14 = vector.broadcast %cst_5 : f32 to vector<1x32xf32>
    %15 = arith.maximumf %13, %14 : vector<1x32xf32>
    %cst_6 = arith.constant 9.99999974E-6 : f32
    %16 = vector.broadcast %cst_6 : f32 to vector<1x32xf32>
    %17 = arith.addf %15, %16 : vector<1x32xf32>
    %18 = math.rsqrt %17 : vector<1x32xf32>
    %c0_7 = arith.constant 0 : index
    %c0_8 = arith.constant 0 : index
    %c0_9 = arith.constant 0 : index
    %19 = vector.load %arg4[%c0_7, %c0_8, %c0_9] : memref<1x1x32xf32, #tpu.memory_space<vmem>>, vector<1x1x32xf32>
    %20 = vector.shape_cast %19 : vector<1x1x32xf32> to vector<1x32xf32>
    %21 = arith.mulf %18, %20 : vector<1x32xf32>
    %c0_10 = arith.constant 0 : index
    %c0_11 = arith.constant 0 : index
    %c0_12 = arith.constant 0 : index
    %22 = vector.load %arg3[%c0_10, %c0_11, %c0_12] : memref<1x1x32xf32, #tpu.memory_space<vmem>>, vector<1x1x32xf32>
    %23 = vector.shape_cast %22 : vector<1x1x32xf32> to vector<1x32xf32>
    %24 = arith.mulf %6, %21 : vector<1x32xf32>
    %25 = arith.subf %23, %24 : vector<1x32xf32>
    %26 = vector.broadcast %21 : vector<1x32xf32> to vector<16x32xf32>
    %27 = arith.mulf %2, %26 : vector<16x32xf32>
    %28 = vector.broadcast %25 : vector<1x32xf32> to vector<16x32xf32>
    %29 = arith.addf %27, %28 : vector<16x32xf32>
    %cst_13 = arith.constant 0.000000e+00 : f32
    %30 = vector.broadcast %cst_13 : f32 to vector<16x32xf32>
    %31 = arith.cmpf oge, %29, %30 : vector<16x32xf32>
    %cst_14 = arith.constant 0.00999999977 : f32
    %32 = vector.broadcast %cst_14 : f32 to vector<16x32xf32>
    %33 = arith.mulf %32, %29 : vector<16x32xf32>
    %34 = arith.select %31, %29, %33 : vector<16x32xi1>, vector<16x32xf32>
    %c0_15 = arith.constant 0 : index
    %c0_16 = arith.constant 0 : index
    %c0_17 = arith.constant 0 : index
    %35 = vector.load %arg2[%c0_15, %c0_16, %c0_17] : memref<1x16x32xbf16, #tpu.memory_space<vmem>>, vector<1x16x32xbf16>
    %36 = vector.shape_cast %35 : vector<1x16x32xbf16> to vector<16x32xbf16>
    %37 = arith.extf %36 : vector<16x32xbf16> to vector<16x32xf32>
    %38 = arith.addf %34, %37 : vector<16x32xf32>
    %39 = arith.truncf %38 : vector<16x32xf32> to vector<16x32xbf16>
    %c0_18 = arith.constant 0 : index
    %c0_19 = arith.constant 0 : index
    %c0_20 = arith.constant 0 : index
    %40 = vector.load %arg5[%c0_18, %c0_19, %c0_20] : memref<1x4x32xbf16, #tpu.memory_space<vmem>>, vector<1x4x32xbf16>
    %41 = vector.shape_cast %40 : vector<1x4x32xbf16> to vector<4x32xbf16>
    %cst_21 = arith.constant dense<0.000000e+00> : vector<4x16xf32>
    %42 = tpu.matmul %41, %39, %cst_21 {dimension_numbers = #tpu.dot_dimension_numbers<[1], [1], [0], [0], [0, 0, 1, 0], [], []>} : vector<4x32xbf16>, vector<16x32xbf16>, vector<4x16xf32> -> vector<4x16xf32>
    %c0_22 = arith.constant 0 : index
    %c0_23 = arith.constant 0 : index
    %43 = vector.load %arg6[%c0_22, %c0_23] : memref<4x1xf32, #tpu.memory_space<vmem>>, vector<4x1xf32>
    %44 = vector.broadcast %43 : vector<4x1xf32> to vector<4x16xf32>
    %45 = arith.addf %42, %44 : vector<4x16xf32>
    %c0_24 = arith.constant 0 : index
    %c0_25 = arith.constant 0 : index
    %c0_26 = arith.constant 0 : index
    %46 = vector.load %arg7[%c0_24, %c0_25, %c0_26] : memref<1x4x16xf32, #tpu.memory_space<vmem>>, vector<1x4x16xf32>
    %47 = vector.shape_cast %46 : vector<1x4x16xf32> to vector<4x16xf32>
    %48 = vector.shape_cast %45 : vector<4x16xf32> to vector<1x4x16xf32>
    tpu.vector_store %arg7[%c0_24, %c0_25, %c0_26], %48 {strides = array<i32>} : memref<1x4x16xf32, #tpu.memory_space<vmem>>, vector<1x4x16xf32>,
    return
  }
  func.func @transform_0(%arg0: i32) -> (i32, i32, i32) {
    %c0_i32 = arith.constant 0 : i32
    %c0_i32_0 = arith.constant 0 : i32
    %c0_i32_1 = arith.constant 0 : i32
    return %arg0, %c0_i32, %c0_i32_0 : i32, i32, i32
  }
  func.func @transform_1(%arg0: i32) -> (i32, i32, i32) {
    %c0_i32 = arith.constant 0 : i32
    %c0_i32_0 = arith.constant 0 : i32
    %c0_i32_1 = arith.constant 0 : i32
    return %arg0, %c0_i32, %c0_i32_0 : i32, i32, i32
  }
  func.func @transform_2(%arg0: i32) -> (i32, i32, i32) {
    %c0_i32 = arith.constant 0 : i32
    %c0_i32_0 = arith.constant 0 : i32
    %c0_i32_1 = arith.constant 0 : i32
    return %arg0, %c0_i32, %c0_i32_0 : i32, i32, i32
  }
  func.func @transform_3(%arg0: i32) -> (i32, i32, i32) {
    %c0_i32 = arith.constant 0 : i32
    %c0_i32_0 = arith.constant 0 : i32
    %c0_i32_1 = arith.constant 0 : i32
    return %arg0, %c0_i32, %c0_i32_0 : i32, i32, i32
  }
  func.func @transform_4(%arg0: i32) -> (i32, i32, i32) {
    %c0_i32 = arith.constant 0 : i32
    %c0_i32_0 = arith.constant 0 : i32
    %c0_i32_1 = arith.constant 0 : i32
    %c0_i32_2 = arith.constant 0 : i32
    return %c0_i32, %c0_i32_0, %c0_i32_1 : i32, i32, i32
  }
  func.func @transform_5(%arg0: i32) -> (i32, i32) {
    %c0_i32 = arith.constant 0 : i32
    %c0_i32_0 = arith.constant 0 : i32
    %c0_i32_1 = arith.constant 0 : i32
    return %c0_i32, %c0_i32_0 : i32, i32
  }
  func.func @transform_6(%arg0: i32) -> (i32, i32, i32) {
    %c0_i32 = arith.constant 0 : i32
    %c0_i32_0 = arith.constant 0 : i32
    %c0_i32_1 = arith.constant 0 : i32
    return %arg0, %c0_i32, %c0_i32_0 : i32, i32, i32
  }
}

</mosaic_0001>

<bundles_post_ra>
// kernel: decoder_forward.5
= control target key start
LH: loop header
LB: loop body
LE: loop exit
PB: predicated region body
PF: predicated region fallthrough
CT: control target
= control target key end

     0   :  { %s779_s21 = smov 0   ;;  %s856_s0 = inlined_call_operand.vmem [shape: f32[2,8,4], index: 0, kind: input, shape index: {}]   ;;  %s857_s1 = inlined_call_operand.vmem [shape: bf16[4,32], index: 1, kind: input, shape index: {}]   ;;  %s858_s2 = inlined_call_operand.vmem [shape: f32[1,32], index: 2, kind: input, shape index: {}]   ;;  %s859_s3 = inlined_call_operand.vmem [shape: bf16[3,32,32], index: 3, kind: input, shape index: {}]   ;;  %s860_s4 = inlined_call_operand.vmem [shape: f32[1,32], index: 4, kind: input, shape index: {}]   ;;  %s861_s5 = inlined_call_operand.vmem [shape: bf16[2,8,32], index: 5, kind: output, shape index: {0}]   ;;  %s862_s6 = inlined_call_operand.vmem [shape: bf16[2,8,32], index: 6, kind: output, shape index: {1}]  }
   0x1 LB: > { %s645_s22 = sadd.s32 4294967295, %s740_s21   ;;  %p649_p0 = scmp.ge.s32.totalorder %s740_s21, 1  ;;  %s740_s21 = sphi %s779_s21, %s17_s21  }
   0x2   : > { %p214_p1 = scmp.lt.s32.totalorder %s740_s21, 3 }
   0x4   : > { %p215_p2 = pnand %p649_p0, %p214_p1 }
   0x5   : > { %v261_v0 = vld [vmem:[%s857_s1] sm:$0x3] (!%p215_p2)  ;;  %vm273_vm0 = vcmask (!%p215_p2), 1041408   ;;  %p246_p3 = scmp.lt.s32.totalorder (!%p215_p2), %s645_s22, 1  ;;  %v742_v1 = vmov (!%p215_p2), 0.0   ;;  %vm743_vm1 = vmmov (!%p215_p2), 0  }
   0x6   : > { %218 = sbr.rel (%p215_p2) target bundleno = 514 (0x202), region = 40  ;;  %686 = vmatprep.subr.bf16.mxu0 (!%p215_p2), %v742_v1  ;;  %v275_v2 = vsel (!%p215_p2), %vm273_vm0, %v261_v0, 0  ;;  %688 = vmatprep.mubr.msk.bf16.mxu0 (!%p215_p2), %vm743_vm1, %v742_v1  ;;  %vm269_vm2 = vcmask (!%p215_p2), 31744   ;;  %v726_v5 = vld [vmem:[%s859_s3] sm:$0xff] (!%p215_p2)   ;;  %v727_v6 = vld [vmem:[%s859_s3 + $0x8] sm:$0xff] (!%p215_p2)   ;;  %v728_v7 = vld [vmem:[%s859_s3 + $0x10] sm:$0xff] (!%p215_p2)  }
   0x7   : > { %687 = vmatpush3.bf16.msra.mxu0 (!%p215_p2), %v275_v2  ;;  %692 = vmatprep.subr.bf16.mxu1 (!%p215_p2), %v742_v1  ;;  %v729_v8 = vld [vmem:[%s859_s3 + $0x18] sm:$0xff] (!%p215_p2)   ;;  %v653_v9 = vld [vmem:[%s858_s2] ss:$0 sm:$0xff] (!%p215_p2)  ;;  %vm317_vm3 = vcmask (!%p215_p2), 261120   ;;  %vm357_vm5 = vcmask (!%p215_p2), 1040384   ;;  %vm348_vm6 = vcmask (!%p215_p2), 257024  }
   0x8   : > { %700 = vmatprep.subr.bf16.mxu0 (!%p215_p2), %v742_v1  ;;  %696 = vmatprep.mubr.msk.bf16.mxu1 (!%p215_p2), %vm743_vm1, %v742_v1  ;;  %v730_v54 = vld [vmem:[%s859_s3 + $0x20] sm:$0xff] (!%p215_p2)   ;;  %v731_v56 = vld [vmem:[%s859_s3 + $0x28] sm:$0xff] (!%p215_p2)  }
   0x9   : > { %693 = vmatpush3.bf16.msra.mxu1 (!%p215_p2), %v728_v7 }
   0xa   : > { %694 = vmatprep.subr.bf16.mxu1 (!%p215_p2), %v742_v1 }
   0xd   : > { %s864_s22 = smov (!%p246_p3, %s645_s22), 1  ;;  %695 = vmatpush3.bf16.msra.mxu1 %v729_v8 }
   0xe   : > { %s650_s25 = sshll.u32 %s864_s22, 3  ;;  %708 = vmatprep.subr.bf16.mxu1 %v742_v1  ;;  %s651_s15 = sshll.u32 %s864_s22, 2 }
   0xf   : > { %s249_s28 = scalar_lea.vmem %s856_s0, %s650_s25  ;;  %s257_s18 = scalar_lea.vmem %s862_s6, %s651_s15 }
  0x10   : > { %v259_v3 = vld [vmem:[%s249_s28] sm:$0xff]  ;;  %s253_s29 = scalar_lea.vmem %s861_s5, %s651_s15 }
  0x11   : > { %v260_v4 = vpack.c.bf16 %v259_v3, %v259_v3 }
  0x13   : > { %689 = vmatmul.mubr.msk.bf16.vlgmr.msra.gmra.mrb[0].mxu0 %vm269_vm2, %v260_v4 }
  0x14   : > { %704 = vmatprep.mubr.msk.bf16.mxu0 %vm743_vm1, %v742_v1  ;;  %701 = vmatpush3.bf16.msra.mxu0 %v726_v5  ;;  %v672_v5 = vld [vmem:[%s860_s4] ss:$0 sm:$0xff] }
  0x15   : > { %702 = vmatprep.subr.bf16.mxu0 %v742_v1 }
  0x18   : > { %703 = vmatpush3.bf16.msra.mxu0 %v727_v6 }
  0xe6   : > { %v311_v10 = vpop.f32.mrb[0].mxu0 }
  0xe7   : > { %v312_v11 = vadd.f32 %v653_v9, %v311_v10  ;;  %v690_v12 = vpop.f32.mrb[1].mxu0 }
  0xe8   : > { %v314_v13 = vpop.f32.mrb[2].mxu0 }
  0xe9   : > { %v318_v14 = vsel %vm317_vm3, %v312_v11, 0.0  ;;  %v326_v15 = vmul.f32 %v312_v11, %v312_v11  ;;  %v691_v16 = vpop.f32.mrb[3].mxu0 }
  0xea   : > { %v319_v17 = vrot.slane %v318_v14, 4 }
  0xeb   : > { %v327_v18 = vsel %vm317_vm3, %v326_v15, 0.0 }
  0xec   : > { %v320_v19 = vadd.f32 %v319_v17, %v318_v14  ;;  %v328_v20 = vrot.slane %v327_v18, 4 }
  0xee   : > { %v321_v21 = vrot.slane %v320_v19, 2  ;;  %v329_v22 = vadd.f32 %v328_v20, %v327_v18 }
  0xf0   : > { %v322_v23 = vadd.f32 %v321_v21, %v320_v19  ;;  %v330_v24 = vrot.slane %v329_v22, 2 }
  0xf2   : > { %v323_v25 = vrot.slane %v322_v23, 1  ;;  %v331_v26 = vadd.f32 %v330_v24, %v329_v22 }
  0xf4   : > { %v324_v27 = vadd.f32 %v323_v25, %v322_v23  ;;  %v332_v28 = vrot.slane %v331_v26, 1 }
  0xf6   : > { %v325_v29 = vmul.f32 0.125, %v324_v27  ;;  %v333_v30 = vadd.f32 %v332_v28, %v331_v26 }
  0xf8   : > { %v334_v31 = vmul.f32 0.125, %v333_v30  ;;  %v335_v32 = vmul.f32 %v325_v29, %v325_v29 }
  0xfa   : > { %v336_v33 = vsub.f32 %v334_v31, %v335_v32 }
  0xfc   : > { %v337_v34 = vmax.f32 %v336_v33, 0.0 }
  0xfe   : > { %v338_v35 = vadd.f32 1e-05, %v337_v34 }
 0x100   : > { %732 = vrsqrt.f32 %v338_v35 }
 0x10a   : > { %v733_v36 = vpop.eup %732 }
 0x10b   : > { %v340_v37 = vmul.f32 %v733_v36, %v325_v29  ;;  %v342_v39 = vmul.f32 %v733_v36, %v312_v11 }
 0x10d   : > { %v341_v38 = vsub.f32 0.0, %v340_v37 }
 0x10f   : > { %v343_v40 = vadd.f32 %v342_v39, %v341_v38 }
 0x111   : > { %vm344_vm4 = vcmp.ge.f32.partialorder %v343_v40, 0.0  ;;  %v345_v41 = vmul.f32 0.01, %v343_v40 }
 0x113   : > { %v346_v42 = vsel %vm344_vm4, %v343_v40, %v345_v41 }
 0x114   : > { %v347_v43 = vpack.c.bf16 %v346_v42, %v346_v42  ;;  %v351_v44 = vrot.slane %v346_v42, 1  ;;  %v353_v45 = vrot.slane %v346_v42, 7  ;;  %v355_v46 = vrot.slane %v346_v42, 5 }
 0x116   : > { %v358_v47 = vsel %vm357_vm5, %v351_v44, %v353_v45  ;;  %v359_v48 = vsel %vm357_vm5, %v353_v45, %v355_v46  ;;  %349 = vst.msk [vmem:[%s257_s18] sm:$0xf] %vm348_vm6, %v347_v43 }
 0x117   : > { %v360_v49 = vpack.c.bf16 %v358_v47, %v358_v47  ;;  %v365_v50 = vpack.c.bf16 %v359_v48, %v358_v47 }
 0x119   : > { %705 = vmatmul.mubr.msk.bf16.vlgmr.msra.gmra.mrb[4].mxu0 %vm317_vm3, %v360_v49  ;;  %v374_v51 = vshll.u32 %v365_v50, 16  ;;  %v372_v52 = vshrl.u32 %v365_v50, 16  ;;  %v494_v57 = vrot.slane %v365_v50, 1 }
 0x11b   : > { %v376_v53 = vrot.slane %v374_v51, 1 }
 0x11d   : > { %v377_v55 = vor.u32 %v376_v53, %v372_v52 }
 0x11f   : > { %697 = vmatmul.mubr.msk.bf16.vlgmr.msra.gmra.mrb[0].mxu1 %vm317_vm3, %v377_v55 }
 0x120   : > { %709 = vmatpush3.bf16.msra.mxu1 %v730_v54  ;;  %712 = vmatprep.mubr.msk.bf16.mxu1 %vm743_vm1, %v742_v1 }
 0x121   : > { %710 = vmatprep.subr.bf16.mxu1 %v742_v1 }
 0x124   : > { %711 = vmatpush3.bf16.msra.mxu1 %v731_v56 }
 0x127   : > { %713 = vmatmul.mubr.msk.bf16.vlgmr.msra.gmra.mrb[4].mxu1 %vm317_vm3, %v494_v57 }
 0x1ec   : > { %v482_v58 = vpop.f32.mrb[4].mxu0 }
 0x1ed   : > { %v706_v59 = vpop.f32.mrb[5].mxu0 }
 0x1ee   : > { %v485_v60 = vpop.f32.mrb[6].mxu0 }
 0x1ef   : > { %v707_v61 = vpop.f32.mrb[7].mxu0 }
 0x1f2   : > { %v427_v62 = vpop.f32.mrb[0].mxu1 }
 0x1f3   : > { %v483_v63 = vadd.f32 %v482_v58, %v427_v62  ;;  %v698_v0 = vpop.f32.mrb[1].mxu1 }
 0x1f4   : > { %v430_v2 = vpop.f32.mrb[2].mxu1 }
 0x1f5   : > { %v699_v3 = vpop.f32.mrb[3].mxu1 }
 0x1fa   : > { %v544_v4 = vpop.f32.mrb[4].mxu1 }
 0x1fb   : > { %v550_v1 = vadd.f32 %v544_v4, %v483_v63  ;;  %v714_v6 = vpop.f32.mrb[5].mxu1 }
 0x1fc   : > { %v547_v7 = vpop.f32.mrb[6].mxu1 }
 0x1fd   : > { %v558_v8 = vadd.f32 %v672_v5, %v550_v1  ;;  %v715_v9 = vpop.f32.mrb[7].mxu1 }
 0x1ff   : > { %v559_v10 = vpack.c.bf16 %v558_v8, %v558_v8 }
 0x201   : > { %560 = vst.msk [vmem:[%s253_s29] sm:$0xf] %vm348_vm6, %v559_v10 }
 0x202 PF: > { %s17_s21 = sadd.s32 1, %s740_s21  }
 0x203   : > { %p14_p4 = scmp.ge.s32.totalorder %s17_s21, 4  }
 0x205   :  { %16 = sbr.rel (!%p14_p4) target bundleno = 1 (0x1), region = 84 }

// kernel: decoder_forward.8
= control target key start
LH: loop header
LB: loop body
LE: loop exit
PB: predicated region body
PF: predicated region fallthrough
CT: control target
= control target key end

     0   :  { %s753_s18 = smov 0   ;;  %s825_s0 = inlined_call_operand.vmem [shape: bf16[2,16,32], index: 0, kind: input, shape index: {}]   ;;  %s826_s1 = inlined_call_operand.vmem [shape: f32[2,1,32], index: 1, kind: input, shape index: {}]   ;;  %s827_s2 = inlined_call_operand.vmem [shape: f32[2,1,32], index: 2, kind: input, shape index: {}]   ;;  %s828_s3 = inlined_call_operand.vmem [shape: bf16[3,32,32], index: 3, kind: input, shape index: {}]   ;;  %s829_s4 = inlined_call_operand.vmem [shape: f32[1,32], index: 4, kind: input, shape index: {}]   ;;  %s830_s5 = inlined_call_operand.vmem [shape: bf16[2,16,32], index: 5, kind: output, shape index: {}]  }
   0x1 LB: > { %s623_s19 = sadd.s32 4294967295, %s719_s18   ;;  %p627_p0 = scmp.ge.s32.totalorder %s719_s18, 1  ;;  %s719_s18 = sphi %s753_s18, %s15_s18  }
   0x2   : > { %p203_p1 = scmp.lt.s32.totalorder %s719_s18, 3 }
   0x4   : > { %p204_p2 = pnand %p627_p0, %p203_p1 }
   0x5   : > { %v705_v0 = vld [vmem:[%s828_s3 + $0x10] sm:$0xff] (!%p204_p2)   ;;  %v721_v1 = vmov (!%p204_p2), 0.0   ;;  %v706_v2 = vld [vmem:[%s828_s3] sm:$0xff] (!%p204_p2)   ;;  %v707_v3 = vld [vmem:[%s828_s3 + $0x18] sm:$0xff] (!%p204_p2)   ;;  %vm722_vm0 = vmmov (!%p204_p2), 0   ;;  %p237_p3 = scmp.lt.s32.totalorder (!%p204_p2), %s623_s19, 1  ;;  %v291_v34 = vlaneseq (!%p204_p2) }
   0x6   : > { %207 = sbr.rel (%p204_p2) target bundleno = 309 (0x135), region = 40  ;;  %671 = vmatprep.subr.bf16.mxu0 (!%p204_p2), %v721_v1  ;;  %679 = vmatprep.subr.bf16.mxu1 (!%p204_p2), %v721_v1  ;;  %v708_v4 = vld [vmem:[%s828_s3 + $0x8] sm:$0xff] (!%p204_p2)   ;;  %vm258_vm1 = vcmask (!%p204_p2), 261120   ;;  %vm315_vm4 = vcmask (!%p204_p2), 1040384   ;;  %vm337_vm5 = vsmask.f32 (!%p204_p2), 7424 }
   0x7   : > { %672 = vmatpush3.bf16.msra.mxu0 (!%p204_p2), %v705_v0  ;;  %675 = vmatprep.mubr.msk.bf16.mxu0 (!%p204_p2), %vm722_vm0, %v721_v1  ;;  %v292_v35 = vshrl.u32 (!%p204_p2), %v291_v34, 7  ;;  %vm468_vm6 = vcmask (!%p204_p2), 1046528   ;;  %vm547_vm7 = vcmask (!%p204_p2), 257024  }
   0x8   : > { %680 = vmatpush3.bf16.msra.mxu1 (!%p204_p2), %v706_v2  ;;  %673 = vmatprep.subr.bf16.mxu0 (!%p204_p2), %v721_v1 }
   0x9   : > { %681 = vmatprep.subr.bf16.mxu1 (!%p204_p2), %v721_v1  ;;  %683 = vmatprep.mubr.msk.bf16.mxu1 (!%p204_p2), %vm722_vm0, %v721_v1  ;;  %v293_v37 = vsub.s32 (!%p204_p2), 0, %v292_v35 }
   0xb   : > { %674 = vmatpush3.bf16.msra.mxu0 (!%p204_p2), %v707_v3 }
   0xc   : > { %682 = vmatpush3.bf16.msra.mxu1 (!%p204_p2), %v708_v4  ;;  %687 = vmatprep.subr.bf16.mxu0 (!%p204_p2), %v721_v1 }
   0xd   : > { %s832_s19 = smov (!%p237_p3, %s623_s19), 1 }
   0xe   : > { %s654_s28 = sshll.u32 %s832_s19, 3  ;;  %s247_s9 = scalar_lea.vmem %s827_s2, %s832_s19 }
   0xf   : > { %s241_s6 = scalar_lea.vmem %s825_s0, %s654_s28  ;;  %v286_v36 = vld [vmem:[%s247_s9] sm:$0x1]  ;;  %s244_s12 = scalar_lea.vmem %s826_s1, %s832_s19 }
  0x10   : > { %v659_v5 = vld [vmem:[%s241_s6] sm:$0xff]   ;;  %s252_s23 = scalar_lea.vmem %s830_s5, %s654_s28 }
  0x11   : > { %v660_v6 = vunpack.c.l.bf16 %v659_v5  ;;  %v661_v7 = vunpack.c.h.bf16 %v659_v5  ;;  %v288_v40 = vld [vmem:[%s244_s12] sm:$0x1] }
  0x12   : > { %v709_v5 = vld [vmem:[%s828_s3 + $0x20] sm:$0xff]  }
  0x13   : > { %v259_v8 = vsel %vm258_vm1, %v660_v6, 0.0  ;;  %v260_v9 = vsel %vm258_vm1, %v661_v7, 0.0  ;;  %v269_v10 = vmul.f32 %v660_v6, %v660_v6  ;;  %v270_v11 = vmul.f32 %v661_v7, %v661_v7 }
  0x14   : > { %v261_v12 = vadd.f32 %v260_v9, %v259_v8 }
  0x15   : > { %v271_v13 = vsel %vm258_vm1, %v269_v10, 0.0  ;;  %v272_v14 = vsel %vm258_vm1, %v270_v11, 0.0 }
  0x16   : > { %v262_v15 = vrot.slane %v261_v12, 4  ;;  %v273_v16 = vadd.f32 %v272_v14, %v271_v13 }
  0x18   : > { %v263_v17 = vadd.f32 %v262_v15, %v261_v12  ;;  %v274_v18 = vrot.slane %v273_v16, 4 }
  0x1a   : > { %v264_v19 = vrot.slane %v263_v17, 2  ;;  %v275_v20 = vadd.f32 %v274_v18, %v273_v16 }
  0x1c   : > { %v265_v21 = vadd.f32 %v264_v19, %v263_v17  ;;  %v276_v22 = vrot.slane %v275_v20, 2 }
  0x1e   : > { %v266_v23 = vrot.slane %v265_v21, 1  ;;  %v277_v24 = vadd.f32 %v276_v22, %v275_v20 }
  0x20   : > { %v267_v25 = vadd.f32 %v266_v23, %v265_v21  ;;  %v278_v26 = vrot.slane %v277_v24, 1 }
  0x22   : > { %v268_v27 = vmul.f32 0.0625, %v267_v25  ;;  %v279_v28 = vadd.f32 %v278_v26, %v277_v24 }
  0x24   : > { %v280_v29 = vmul.f32 0.0625, %v279_v28  ;;  %v281_v30 = vmul.f32 %v268_v27, %v268_v27 }
  0x26   : > { %v282_v31 = vsub.f32 %v280_v29, %v281_v30 }
  0x28   : > { %v283_v32 = vmax.f32 %v282_v31, 0.0 }
  0x2a   : > { %v284_v33 = vadd.f32 1e-05, %v283_v32 }
  0x2c   : > { %711 = vrsqrt.f32 %v284_v33 }
  0x36   : > { %v712_v38 = vpop.eup %711 }
  0x37   : > { %v287_v39 = vmul.f32 %v712_v38, %v286_v36 }
  0x39   : > { %v289_v41 = vmul.f32 %v287_v39, %v268_v27  ;;  %v294_v42 = vrot.slane %v287_v39, %v293_v37 }
  0x3b   : > { %v290_v43 = vsub.f32 %v288_v40, %v289_v41  ;;  %v295_v44 = vmul.f32 %v660_v6, %v294_v42  ;;  %v296_v45 = vmul.f32 %v661_v7, %v294_v42  ;;  %v710_v7 = vld [vmem:[%s828_s3 + $0x28] sm:$0xff]  }
  0x3d   : > { %v301_v46 = vrot.slane %v290_v43, %v293_v37 }
  0x3f   : > { %v303_v47 = vadd.f32 %v301_v46, %v295_v44  ;;  %v304_v48 = vadd.f32 %v301_v46, %v296_v45 }
  0x41   : > { %vm305_vm2 = vcmp.ge.f32.partialorder %v303_v47, 0.0  ;;  %vm306_vm3 = vcmp.ge.f32.partialorder %v304_v48, 0.0  ;;  %v307_v49 = vmul.f32 0.01, %v303_v47  ;;  %v308_v50 = vmul.f32 0.01, %v304_v48 }
  0x43   : > { %v309_v51 = vsel %vm305_vm2, %v303_v47, %v307_v49  ;;  %v310_v52 = vsel %vm306_vm3, %v304_v48, %v308_v50 }
  0x44   : > { %v312_v53 = vrot.slane %v309_v51, 1  ;;  %v316_v54 = vrot.slane %v309_v51, 7  ;;  %v317_v55 = vrot.slane %v310_v52, 7  ;;  %v322_v56 = vrot.slane %v310_v52, 5 }
  0x46   : > { %v318_v57 = vsel %vm315_vm4, %v316_v54, %v317_v55  ;;  %v324_v58 = vsel %vm315_vm4, %v312_v53, %v316_v54  ;;  %v325_v59 = vsel %vm315_vm4, %v317_v55, %v322_v56 }
  0x47   : > { %v326_v60 = vpack.c.bf16 %v318_v57, %v324_v58  ;;  %v331_v61 = vpack.c.bf16 %v325_v59, %v325_v59 }
  0x49   : > { %v339_v62 = vshrl.u32 %v326_v60, 16  ;;  %v341_v63 = vshll.u32 %v326_v60, 16  ;;  %v346_v0 = vshll.u32 %v331_v61, 16  ;;  %684 = vmatmul.mubr.msk.bf16.vlgmr.msra.gmra.mrb[0].mxu1 %vm258_vm1, %v326_v60  ;;  %v469_v8 = vrot.slane %v326_v60, 1 }
  0x4a   : > { %v470_v9 = vrot.slane %v331_v61, 1 }
  0x4b   : > { %v343_v2 = vrot.slane %v341_v63, 1  ;;  %v348_v3 = vrot.slane %v346_v0, 1 }
  0x4c   : > { %v471_v10 = vsel %vm468_vm6, %v469_v8, %v470_v9 }
  0x4d   : > { %v344_v4 = vor.u32 %v343_v2, %v339_v62 }
  0x4f   : > { %v349_v6 = vsel %vm337_vm5, %v344_v4, %v348_v3 }
  0x50   : > { %676 = vmatmul.mubr.msk.bf16.vlgmr.msra.gmra.mrb[0].mxu0 %vm258_vm1, %v349_v6 }
  0x51   : > { %688 = vmatpush3.bf16.msra.mxu0 %v709_v5  ;;  %691 = vmatprep.mubr.msk.bf16.mxu0 %vm722_vm0, %v721_v1 }
  0x52   : > { %689 = vmatprep.subr.bf16.mxu0 %v721_v1  ;;  %v649_v1 = vld [vmem:[%s829_s4] ss:$0 sm:$0xff] }
  0x55   : > { %690 = vmatpush3.bf16.msra.mxu0 %v710_v7 }
  0x58   : > { %692 = vmatmul.mubr.msk.bf16.vlgmr.msra.gmra.mrb[4].mxu0 %vm258_vm1, %v471_v10 }
 0x11c   : > { %v454_v11 = vpop.f32.mrb[0].mxu1 }
 0x11d   : > { %v685_v12 = vpop.f32.mrb[1].mxu1 }
 0x11e   : > { %v457_v13 = vpop.f32.mrb[2].mxu1 }
 0x11f   : > { %v686_v14 = vpop.f32.mrb[3].mxu1 }
 0x123   : > { %v399_v15 = vpop.f32.mrb[0].mxu0 }
 0x124   : > { %v455_v16 = vadd.f32 %v454_v11, %v399_v15  ;;  %v677_v17 = vpop.f32.mrb[1].mxu0 }
 0x125   : > { %v402_v18 = vpop.f32.mrb[2].mxu0 }
 0x126   : > { %v458_v19 = vadd.f32 %v457_v13, %v402_v18  ;;  %v678_v20 = vpop.f32.mrb[3].mxu0 }
 0x12b   : > { %v521_v21 = vpop.f32.mrb[4].mxu0 }
 0x12c   : > { %v528_v22 = vadd.f32 %v521_v21, %v455_v16  ;;  %v693_v23 = vpop.f32.mrb[5].mxu0 }
 0x12d   : > { %v524_v24 = vpop.f32.mrb[6].mxu0 }
 0x12e   : > { %v537_v25 = vadd.f32 %v649_v1, %v528_v22  ;;  %v529_v26 = vadd.f32 %v524_v24, %v458_v19  ;;  %v694_v27 = vpop.f32.mrb[7].mxu0 }
 0x130   : > { %v656_v28 = vpack.c.bf16 %v537_v25, %v537_v25  ;;  %v538_v29 = vadd.f32 %v649_v1, %v529_v26 }
 0x132   : > { %548 = vst.msk [vmem:[%s252_s23] sm:$0xf] %vm547_vm7, %v656_v28  ;;  %v657_v30 = vpack.c.bf16 %v538_v29, %v538_v29 }
 0x134   : > { %549 = vst.msk [vmem:[%s252_s23 + $0x4] sm:$0xf] %vm547_vm7, %v657_v30 }
 0x135 PF: > { %s15_s18 = sadd.s32 1, %s719_s18  }
 0x136   : > { %p12_p4 = scmp.ge.s32.totalorder %s15_s18, 4  }
 0x138   :  { %14 = sbr.rel (!%p12_p4) target bundleno = 1 (0x1), region = 78 }

// kernel: decoder_forward.6
= control target key start
LH: loop header
LB: loop body
LE: loop exit
PB: predicated region body
PF: predicated region fallthrough
CT: control target
= control target key end

     0   :  { %s695_s18 = smov 0   ;;  %s765_s0 = inlined_call_operand.vmem [shape: bf16[2,8,32], index: 0, kind: input, shape index: {}]   ;;  %s766_s1 = inlined_call_operand.vmem [shape: f32[2,1,32], index: 1, kind: input, shape index: {}]   ;;  %s767_s2 = inlined_call_operand.vmem [shape: f32[2,1,32], index: 2, kind: input, shape index: {}]   ;;  %s768_s3 = inlined_call_operand.vmem [shape: bf16[3,32,64], index: 3, kind: input, shape index: {}]   ;;  %s769_s4 = inlined_call_operand.vmem [shape: f32[1,64], index: 4, kind: input, shape index: {}]   ;;  %s770_s5 = inlined_call_operand.vmem [shape: bf16[2,8,64], index: 5, kind: output, shape index: {}]  }
   0x1 LB: > { %s577_s19 = sadd.s32 4294967295, %s661_s18   ;;  %p581_p0 = scmp.ge.s32.totalorder %s661_s18, 1  ;;  %s661_s18 = sphi %s695_s18, %s15_s18  }
   0x2   : > { %p202_p1 = scmp.lt.s32.totalorder %s661_s18, 3 }
   0x4   : > { %p203_p2 = pnand %p581_p0, %p202_p1 }
   0x5   : > { %v647_v0 = vld [vmem:[%s768_s3 + $0x10] sm:$0xff] (!%p203_p2)   ;;  %v663_v1 = vmov (!%p203_p2), 0.0   ;;  %v648_v2 = vld [vmem:[%s768_s3] sm:$0xff] (!%p203_p2)   ;;  %v649_v3 = vld [vmem:[%s768_s3 + $0x18] sm:$0xff] (!%p203_p2)   ;;  %vm664_vm0 = vmmov (!%p203_p2), 0   ;;  %p234_p3 = scmp.lt.s32.totalorder (!%p203_p2), %s577_s19, 1  ;;  %v279_v28 = vlaneseq (!%p203_p2) }
   0x6   : > { %206 = sbr.rel (%p203_p2) target bundleno = 304 (0x130), region = 40  ;;  %613 = vmatprep.subr.bf16.mxu0 (!%p203_p2), %v663_v1  ;;  %621 = vmatprep.subr.bf16.mxu1 (!%p203_p2), %v663_v1  ;;  %v650_v4 = vld [vmem:[%s768_s3 + $0x8] sm:$0xff] (!%p203_p2)   ;;  %vm251_vm1 = vcmask (!%p203_p2), 261120   ;;  %vm301_vm3 = vcmask (!%p203_p2), 1040384   ;;  %v651_v53 = vld [vmem:[%s768_s3 + $0x20] sm:$0xff] (!%p203_p2)   ;;  %vm504_vm4 = vcmask (!%p203_p2), 519168  }
   0x7   : > { %614 = vmatpush3.bf16.msra.mxu0 (!%p203_p2), %v647_v0  ;;  %617 = vmatprep.mubr.msk.bf16.mxu0 (!%p203_p2), %vm664_vm0, %v663_v1  ;;  %v280_v29 = vshrl.u32 (!%p203_p2), %v279_v28, 7  ;;  %v652_v55 = vld [vmem:[%s768_s3 + $0x28] sm:$0xff] (!%p203_p2)  }
   0x8   : > { %622 = vmatpush3.bf16.msra.mxu1 (!%p203_p2), %v648_v2  ;;  %615 = vmatprep.subr.bf16.mxu0 (!%p203_p2), %v663_v1 }
   0x9   : > { %623 = vmatprep.subr.bf16.mxu1 (!%p203_p2), %v663_v1  ;;  %625 = vmatprep.mubr.msk.bf16.mxu1 (!%p203_p2), %vm664_vm0, %v663_v1  ;;  %v281_v31 = vsub.s32 (!%p203_p2), 0, %v280_v29 }
   0xb   : > { %616 = vmatpush3.bf16.msra.mxu0 (!%p203_p2), %v649_v3 }
   0xc   : > { %624 = vmatpush3.bf16.msra.mxu1 (!%p203_p2), %v650_v4  ;;  %629 = vmatprep.subr.bf16.mxu0 (!%p203_p2), %v663_v1  ;;  %v601_v4 = vld [vmem:[%s769_s4] ss:$0 sm:$0xff] (!%p203_p2) }
   0xd   : > { %s772_s19 = smov (!%p234_p3, %s577_s19), 1 }
   0xe   : > { %s582_s28 = sshll.u32 %s772_s19, 2  ;;  %s243_s9 = scalar_lea.vmem %s767_s2, %s772_s19 }
   0xf   : > { %s237_s6 = scalar_lea.vmem %s765_s0, %s582_s28  ;;  %v274_v30 = vld [vmem:[%s243_s9] sm:$0x1]  ;;  %s240_s12 = scalar_lea.vmem %s766_s1, %s772_s19 }
  0x10   : > { %v249_v5 = vld [vmem:[%s237_s6] sm:$0xf]  ;;  %s247_s23 = scalar_lea.vmem %s770_s5, %s582_s28 }
  0x11   : > { %v250_v6 = vunpack.c.l.bf16 %v249_v5  ;;  %v276_v34 = vld [vmem:[%s240_s12] sm:$0x1] }
  0x13   : > { %v252_v7 = vsel %vm251_vm1, %v250_v6, 0.0  ;;  %v260_v8 = vmul.f32 %v250_v6, %v250_v6 }
  0x14   : > { %v253_v9 = vrot.slane %v252_v7, 4 }
  0x15   : > { %v261_v10 = vsel %vm251_vm1, %v260_v8, 0.0 }
  0x16   : > { %v254_v11 = vadd.f32 %v253_v9, %v252_v7  ;;  %v262_v12 = vrot.slane %v261_v10, 4 }
  0x18   : > { %v255_v13 = vrot.slane %v254_v11, 2  ;;  %v263_v14 = vadd.f32 %v262_v12, %v261_v10 }
  0x1a   : > { %v256_v15 = vadd.f32 %v255_v13, %v254_v11  ;;  %v264_v16 = vrot.slane %v263_v14, 2 }
  0x1c   : > { %v257_v17 = vrot.slane %v256_v15, 1  ;;  %v265_v18 = vadd.f32 %v264_v16, %v263_v14 }
  0x1e   : > { %v258_v19 = vadd.f32 %v257_v17, %v256_v15  ;;  %v266_v20 = vrot.slane %v265_v18, 1 }
  0x20   : > { %v259_v21 = vmul.f32 0.125, %v258_v19  ;;  %v267_v22 = vadd.f32 %v266_v20, %v265_v18 }
  0x22   : > { %v268_v23 = vmul.f32 0.125, %v267_v22  ;;  %v269_v24 = vmul.f32 %v259_v21, %v259_v21 }
  0x24   : > { %v270_v25 = vsub.f32 %v268_v23, %v269_v24 }
  0x26   : > { %v271_v26 = vmax.f32 %v270_v25, 0.0 }
  0x28   : > { %v272_v27 = vadd.f32 1e-05, %v271_v26 }
  0x2a   : > { %653 = vrsqrt.f32 %v272_v27 }
  0x34   : > { %v654_v32 = vpop.eup %653 }
  0x35   : > { %v275_v33 = vmul.f32 %v654_v32, %v274_v30 }
  0x37   : > { %v277_v35 = vmul.f32 %v275_v33, %v259_v21  ;;  %v282_v36 = vrot.slane %v275_v33, %v281_v31 }
  0x39   : > { %v278_v37 = vsub.f32 %v276_v34, %v277_v35  ;;  %v283_v38 = vmul.f32 %v282_v36, %v250_v6 }
  0x3b   : > { %v288_v39 = vrot.slane %v278_v37, %v281_v31 }
  0x3d   : > { %v290_v40 = vadd.f32 %v288_v39, %v283_v38 }
  0x3f   : > { %vm291_vm2 = vcmp.ge.f32.partialorder %v290_v40, 0.0  ;;  %v292_v41 = vmul.f32 0.01, %v290_v40 }
  0x41   : > { %v293_v42 = vsel %vm291_vm2, %v290_v40, %v292_v41 }
  0x42   : > { %v295_v43 = vrot.slane %v293_v42, 1  ;;  %v297_v44 = vrot.slane %v293_v42, 7  ;;  %v299_v45 = vrot.slane %v293_v42, 5 }
  0x44   : > { %v302_v46 = vsel %vm301_vm3, %v295_v43, %v297_v44  ;;  %v303_v47 = vsel %vm301_vm3, %v297_v44, %v299_v45 }
  0x45   : > { %v309_v48 = vpack.c.bf16 %v303_v47, %v302_v46  ;;  %v304_v49 = vpack.c.bf16 %v302_v46, %v302_v46 }
  0x47   : > { %v316_v50 = vshrl.u32 %v309_v48, 16  ;;  %v318_v51 = vshll.u32 %v309_v48, 16  ;;  %626 = vmatmul.mubr.msk.bf16.vlgmr.msra.gmra.mrb[0].mxu1 %vm251_vm1, %v304_v49  ;;  %v438_v56 = vrot.slane %v309_v48, 1 }
  0x49   : > { %v320_v52 = vrot.slane %v318_v51, 1 }
  0x4b   : > { %v321_v54 = vor.u32 %v320_v52, %v316_v50 }
  0x4d   : > { %618 = vmatmul.mubr.msk.bf16.vlgmr.msra.gmra.mrb[0].mxu0 %vm251_vm1, %v321_v54 }
  0x4e   : > { %630 = vmatpush3.bf16.msra.mxu0 %v651_v53  ;;  %633 = vmatprep.mubr.msk.bf16.mxu0 %vm664_vm0, %v663_v1 }
  0x4f   : > { %631 = vmatprep.subr.bf16.mxu0 %v663_v1 }
  0x52   : > { %632 = vmatpush3.bf16.msra.mxu0 %v652_v55 }
  0x55   : > { %634 = vmatmul.mubr.msk.bf16.vlgmr.msra.gmra.mrb[4].mxu0 %vm251_vm1, %v438_v56 }
 0x11a   : > { %v426_v57 = vpop.f32.mrb[0].mxu1 }
 0x11b   : > { %v627_v58 = vpop.f32.mrb[1].mxu1 }
 0x11c   : > { %v429_v59 = vpop.f32.mrb[2].mxu1 }
 0x11d   : > { %v628_v60 = vpop.f32.mrb[3].mxu1 }
 0x120   : > { %v371_v61 = vpop.f32.mrb[0].mxu0 }
 0x121   : > { %v427_v62 = vadd.f32 %v426_v57, %v371_v61  ;;  %v619_v63 = vpop.f32.mrb[1].mxu0 }
 0x122   : > { %v374_v0 = vpop.f32.mrb[2].mxu0 }
 0x123   : > { %v620_v2 = vpop.f32.mrb[3].mxu0 }
 0x128   : > { %v488_v3 = vpop.f32.mrb[4].mxu0 }
 0x129   : > { %v494_v1 = vadd.f32 %v488_v3, %v427_v62  ;;  %v635_v5 = vpop.f32.mrb[5].mxu0 }
 0x12a   : > { %v491_v6 = vpop.f32.mrb[6].mxu0 }
 0x12b   : > { %v502_v7 = vadd.f32 %v601_v4, %v494_v1  ;;  %v636_v8 = vpop.f32.mrb[7].mxu0 }
 0x12d   : > { %v503_v9 = vpack.c.bf16 %v502_v7, %v502_v7 }
 0x12f   : > { %505 = vst.msk [vmem:[%s247_s23] sm:$0xf] %vm504_vm4, %v503_v9 }
 0x130 PF: > { %s15_s18 = sadd.s32 1, %s661_s18  }
 0x131   : > { %p12_p4 = scmp.ge.s32.totalorder %s15_s18, 4  }
 0x133   :  { %14 = sbr.rel (!%p12_p4) target bundleno = 1 (0x1), region = 78 }

// kernel: decoder_forward.7
= control target key start
LH: loop header
LB: loop body
LE: loop exit
PB: predicated region body
PF: predicated region fallthrough
CT: control target
= control target key end

     0   :  { %s1036_s24 = smov 0   ;;  %s1132_s0 = inlined_call_operand.vmem [shape: bf16[2,16,32], index: 0, kind: input, shape index: {}]   ;;  %s1133_s1 = inlined_call_operand.vmem [shape: bf16[2,8,32], index: 1, kind: input, shape index: {}]   ;;  %s1134_s2 = inlined_call_operand.vmem [shape: f32[2,1,32], index: 2, kind: input, shape index: {}]   ;;  %s1135_s3 = inlined_call_operand.vmem [shape: f32[2,1,32], index: 3, kind: input, shape index: {}]   ;;  %s1136_s4 = inlined_call_operand.vmem [shape: bf16[3,32,32], index: 4, kind: input, shape index: {}]   ;;  %s1137_s5 = inlined_call_operand.vmem [shape: f32[1,32], index: 5, kind: input, shape index: {}]   ;;  %s1138_s6 = inlined_call_operand.vmem [shape: bf16[2,16,32], index: 6, kind: output, shape index: {0}]   ;;  %s1139_s7 = inlined_call_operand.vmem [shape: bf16[2,16,32], index: 7, kind: output, shape index: {1}]  }
   0x1 LB: > { %s884_s25 = sadd.s32 4294967295, %s990_s24   ;;  %p888_p0 = scmp.ge.s32.totalorder %s990_s24, 1  ;;  %s990_s24 = sphi %s1036_s24, %s18_s24  }
   0x2   : > { %p265_p1 = scmp.lt.s32.totalorder %s990_s24, 3 }
   0x4   : > { %p266_p2 = pnand %p888_p0, %p265_p1 }
   0x5   : > { %v976_v0 = vld [vmem:[%s1136_s4 + $0x10] sm:$0xff] (!%p266_p2)   ;;  %v992_v1 = vmov (!%p266_p2), 0.0   ;;  %v977_v2 = vld [vmem:[%s1136_s4] sm:$0xff] (!%p266_p2)   ;;  %v978_v3 = vld [vmem:[%s1136_s4 + $0x18] sm:$0xff] (!%p266_p2)   ;;  %vm993_vm0 = vmmov (!%p266_p2), 0   ;;  %p312_p3 = scmp.lt.s32.totalorder (!%p266_p2), %s884_s25, 1  ;;  %v375_v17 = vlaneseq (!%p266_p2) }
   0x6   : > { %269 = sbr.rel (%p266_p2) target bundleno = 311 (0x137), region = 44  ;;  %940 = vmatprep.subr.bf16.mxu0 (!%p266_p2), %v992_v1  ;;  %948 = vmatprep.subr.bf16.mxu1 (!%p266_p2), %v992_v1  ;;  %v979_v4 = vld [vmem:[%s1136_s4 + $0x8] sm:$0xff] (!%p266_p2)   ;;  %vm342_vm1 = vcmask (!%p266_p2), 261120   ;;  %v994_v20 = vmov (!%p266_p2), 1966171168   ;;  %vm532_vm4 = vcmask (!%p266_p2), 1040384  }
   0x7   : > { %941 = vmatpush3.bf16.msra.mxu0 (!%p266_p2), %v976_v0  ;;  %944 = vmatprep.mubr.msk.bf16.mxu0 (!%p266_p2), %vm993_vm0, %v992_v1  ;;  %v400_v21 = vunpack.c.l.s4 (!%p266_p2), %v994_v20  ;;  %v376_v25 = vshrl.u32 (!%p266_p2), %v375_v17, 7  ;;  %v995_v51 = vmov (!%p266_p2), 1983009808   ;;  %vm554_vm5 = vsmask.f32 (!%p266_p2), 7424 }
   0x8   : > { %949 = vmatpush3.bf16.msra.mxu1 (!%p266_p2), %v977_v2  ;;  %942 = vmatprep.subr.bf16.mxu0 (!%p266_p2), %v992_v1  ;;  %v482_v52 = vunpack.c.l.s4 (!%p266_p2), %v995_v51  ;;  %vm685_vm6 = vcmask (!%p266_p2), 1046528   ;;  %vm525_vm7 = vcmask (!%p266_p2), 257024  }
   0x9   : > { %950 = vmatprep.subr.bf16.mxu1 (!%p266_p2), %v992_v1  ;;  %952 = vmatprep.mubr.msk.bf16.mxu1 (!%p266_p2), %vm993_vm0, %v992_v1  ;;  %v401_v29 = vunpack.c.0.s8 (!%p266_p2), %v400_v21  ;;  %v377_v53 = vsub.s32 (!%p266_p2), 0, %v376_v25 }
   0xa   : > { %v483_v58 = vunpack.c.0.s8 (!%p266_p2), %v482_v52 }
   0xb   : > { %943 = vmatpush3.bf16.msra.mxu0 (!%p266_p2), %v978_v3  ;;  %v404_v35 = vsub.s32 (!%p266_p2), %v401_v29, %v376_v25 }
   0xc   : > { %951 = vmatpush3.bf16.msra.mxu1 (!%p266_p2), %v979_v4  ;;  %956 = vmatprep.subr.bf16.mxu0 (!%p266_p2), %v992_v1 }
   0xd   : > { %s1141_s25 = smov (!%p312_p3, %s884_s25), 1 }
   0xe   : > { %s1067_s11 = sshll.u32 %s1141_s25, 3  ;;  %s891_s15 = sshll.u32 %s1141_s25, 2 }
   0xf   : > { %s316_s14 = scalar_lea.vmem %s1132_s0, %s1067_s11  ;;  %s320_s18 = scalar_lea.vmem %s1133_s1, %s891_s15 }
  0x10   : > { %v928_v5 = vld [vmem:[%s316_s14] sm:$0xff]   ;;  %s326_s21 = scalar_lea.vmem %s1135_s3, %s1141_s25  ;;  %s323_s26 = scalar_lea.vmem %s1134_s2, %s1141_s25 }
  0x11   : > { %v1074_v6 = vunpack.c.l.bf16 %v928_v5  ;;  %v1076_v7 = vunpack.c.h.bf16 %v928_v5  ;;  %v395_v22 = vld [vmem:[%s320_s18] sm:$0xf]  ;;  %s336_s9 = scalar_lea.vmem %s1139_s7, %s1067_s11  ;;  %s331_s15 = scalar_lea.vmem %s1138_s6, %s1067_s11 }
  0x12   : > { %v396_v28 = vunpack.c.l.bf16 %v395_v22  ;;  %v370_v63 = vld [vmem:[%s326_s21] sm:$0x1] }
  0x13   : > { %v343_v8 = vsel %vm342_vm1, %v1074_v6, 0.0  ;;  %v344_v9 = vsel %vm342_vm1, %v1076_v7, 0.0  ;;  %v353_v10 = vmul.f32 %v1074_v6, %v1074_v6  ;;  %v354_v11 = vmul.f32 %v1076_v7, %v1076_v7 }
  0x14   : > { %v345_v12 = vadd.f32 %v344_v9, %v343_v8  ;;  %v398_v34 = vcombine.high %v396_v28, %v396_v28  ;;  %v405_v40 = vrot.slane %v396_v28, %v404_v35  ;;  %v486_v9 = vsub.s32 %v483_v58, %v376_v25 }
  0x15   : > { %v355_v13 = vsel %vm342_vm1, %v353_v10, 0.0  ;;  %v356_v14 = vsel %vm342_vm1, %v354_v11, 0.0  ;;  %v372_v10 = vld [vmem:[%s323_s26] sm:$0x1] }
  0x16   : > { %v346_v15 = vrot.slane %v345_v12, 4  ;;  %v357_v16 = vadd.f32 %v356_v14, %v355_v13  ;;  %v412_v41 = vrot.slane %v398_v34, %v404_v35  ;;  %v413_v44 = vcombine.high %v405_v40, %v405_v40 }
  0x17   : > { %v421_v47 = vrot.slane %v405_v40, %v404_v35 }
  0x18   : > { %v347_v18 = vadd.f32 %v346_v15, %v345_v12  ;;  %v358_v19 = vrot.slane %v357_v16, 4  ;;  %v414_v45 = vcombine.high %v412_v41, %v412_v41  ;;  %v428_v48 = vrot.slane %v412_v41, %v404_v35 }
  0x19   : > { %v435_v49 = vrot.slane %v413_v44, %v404_v35  ;;  %v443_v54 = vcombine.high %v421_v47, %v421_v47  ;;  %v450_v59 = vrot.slane %v421_v47, %v377_v53 }
  0x1a   : > { %v348_v23 = vrot.slane %v347_v18, 2  ;;  %v359_v24 = vadd.f32 %v358_v19, %v357_v16  ;;  %v442_v50 = vrot.slane %v414_v45, %v404_v35  ;;  %v444_v55 = vcombine.high %v428_v48, %v428_v48 }
  0x1b   : > { %v445_v56 = vcombine.high %v435_v49, %v435_v49  ;;  %v454_v60 = vrot.slane %v435_v49, %v377_v53  ;;  %v458_v61 = vrot.slane %v443_v54, %v377_v53  ;;  %v466_v62 = vrot.slane %v428_v48, %v377_v53  ;;  %v980_v48 = vld [vmem:[%s1136_s4 + $0x20] sm:$0xff]  }
  0x1c   : > { %v349_v26 = vadd.f32 %v348_v23, %v347_v18  ;;  %v360_v27 = vrot.slane %v359_v24, 2  ;;  %v446_v57 = vcombine.high %v442_v50, %v442_v50  ;;  %v470_v2 = vrot.slane %v442_v50, %v377_v53  ;;  %v981_v50 = vld [vmem:[%s1136_s4 + $0x28] sm:$0xff]  }
  0x1d   : > { %v462_v0 = vrot.slane %v445_v56, %v377_v53  ;;  %v474_v3 = vrot.slane %v444_v55, %v377_v53  ;;  %v479_v11 = vcombine.low %v450_v59, %v454_v60 }
  0x1e   : > { %v350_v30 = vrot.slane %v349_v26, 1  ;;  %v361_v31 = vadd.f32 %v360_v27, %v359_v24  ;;  %v478_v4 = vrot.slane %v446_v57, %v377_v53  ;;  %v496_v13 = vcombine.low %v466_v62, %v470_v2 }
  0x1f   : > { %v480_v12 = vcombine.low %v458_v61, %v462_v0  ;;  %v487_v20 = vrot.slane %v479_v11, %v486_v9 }
  0x20   : > { %v351_v32 = vadd.f32 %v350_v30, %v349_v26  ;;  %v362_v33 = vrot.slane %v361_v31, 1  ;;  %v497_v14 = vcombine.low %v474_v3, %v478_v4  ;;  %v504_v22 = vrot.slane %v496_v13, %v486_v9  ;;  %v915_v3 = vld [vmem:[%s1137_s5] ss:$0 sm:$0xff] }
  0x21   : > { %v494_v21 = vrot.slane %v480_v12, %v486_v9 }
  0x22   : > { %v352_v36 = vmul.f32 0.0625, %v351_v32  ;;  %v363_v37 = vadd.f32 %v362_v33, %v361_v31  ;;  %v511_v23 = vrot.slane %v497_v14, %v486_v9 }
  0x23   : > { %v495_v25 = vcombine.low %v487_v20, %v494_v21 }
  0x24   : > { %v364_v38 = vmul.f32 0.0625, %v363_v37  ;;  %v365_v39 = vmul.f32 %v352_v36, %v352_v36  ;;  %v512_v28 = vcombine.low %v504_v22, %v511_v23 }
  0x26   : > { %v366_v42 = vsub.f32 %v364_v38, %v365_v39 }
  0x28   : > { %v367_v43 = vmax.f32 %v366_v42, 0.0 }
  0x2a   : > { %v368_v46 = vadd.f32 1e-05, %v367_v43 }
  0x2c   : > { %982 = vrsqrt.f32 %v368_v46 }
  0x36   : > { %v983_v5 = vpop.eup %982 }
  0x37   : > { %v371_v8 = vmul.f32 %v983_v5, %v370_v63 }
  0x39   : > { %v373_v15 = vmul.f32 %v371_v8, %v352_v36  ;;  %v378_v16 = vrot.slane %v371_v8, %v377_v53 }
  0x3b   : > { %v374_v17 = vsub.f32 %v372_v10, %v373_v15  ;;  %v379_v18 = vmul.f32 %v1074_v6, %v378_v16  ;;  %v380_v19 = vmul.f32 %v1076_v7, %v378_v16 }
  0x3d   : > { %v385_v24 = vrot.slane %v374_v17, %v377_v53 }
  0x3f   : > { %v387_v26 = vadd.f32 %v385_v24, %v379_v18  ;;  %v388_v27 = vadd.f32 %v385_v24, %v380_v19 }
  0x41   : > { %vm389_vm2 = vcmp.ge.f32.partialorder %v387_v26, 0.0  ;;  %vm390_vm3 = vcmp.ge.f32.partialorder %v388_v27, 0.0  ;;  %v391_v29 = vmul.f32 0.01, %v387_v26  ;;  %v392_v30 = vmul.f32 0.01, %v388_v27 }
  0x43   : > { %v393_v31 = vsel %vm389_vm2, %v387_v26, %v391_v29  ;;  %v394_v32 = vsel %vm390_vm3, %v388_v27, %v392_v30 }
  0x44   : > { %v515_v33 = vadd.f32 %v495_v25, %v393_v31  ;;  %v516_v34 = vadd.f32 %v512_v28, %v394_v32 }
  0x46   : > { %v529_v6 = vrot.slane %v515_v33, 1  ;;  %v533_v7 = vrot.slane %v515_v33, 7  ;;  %v534_v35 = vrot.slane %v516_v34, 7  ;;  %v539_v36 = vrot.slane %v516_v34, 5 }
  0x47   : > { %v923_v54 = vpack.c.bf16 %v515_v33, %v515_v33  ;;  %v924_v55 = vpack.c.bf16 %v516_v34, %v516_v34 }
  0x48   : > { %v535_v37 = vsel %vm532_vm4, %v533_v7, %v534_v35  ;;  %v541_v38 = vsel %vm532_vm4, %v529_v6, %v533_v7  ;;  %v542_v39 = vsel %vm532_vm4, %v534_v35, %v539_v36 }
  0x49   : > { %v543_v40 = vpack.c.bf16 %v535_v37, %v541_v38  ;;  %v548_v41 = vpack.c.bf16 %v542_v39, %v542_v39  ;;  %526 = vst.msk [vmem:[%s336_s9] sm:$0xf] %vm525_vm7, %v923_v54  ;;  %527 = vst.msk [vmem:[%s336_s9 + $0x4] sm:$0xf] %vm525_vm7, %v924_v55 }
  0x4b   : > { %v556_v42 = vshrl.u32 %v543_v40, 16  ;;  %v558_v43 = vshll.u32 %v543_v40, 16  ;;  %v563_v44 = vshll.u32 %v548_v41, 16  ;;  %953 = vmatmul.mubr.msk.bf16.vlgmr.msra.gmra.mrb[0].mxu1 %vm342_vm1, %v543_v40  ;;  %v686_v51 = vrot.slane %v543_v40, 1 }
  0x4c   : > { %v687_v52 = vrot.slane %v548_v41, 1 }
  0x4d   : > { %v560_v45 = vrot.slane %v558_v43, 1  ;;  %v565_v46 = vrot.slane %v563_v44, 1 }
  0x4e   : > { %v688_v53 = vsel %vm685_vm6, %v686_v51, %v687_v52 }
  0x4f   : > { %v561_v47 = vor.u32 %v560_v45, %v556_v42 }
  0x51   : > { %v566_v49 = vsel %vm554_vm5, %v561_v47, %v565_v46 }
  0x52   : > { %945 = vmatmul.mubr.msk.bf16.vlgmr.msra.gmra.mrb[0].mxu0 %vm342_vm1, %v566_v49 }
  0x53   : > { %957 = vmatpush3.bf16.msra.mxu0 %v980_v48  ;;  %960 = vmatprep.mubr.msk.bf16.mxu0 %vm993_vm0, %v992_v1 }
  0x54   : > { %958 = vmatprep.subr.bf16.mxu0 %v992_v1 }
  0x57   : > { %959 = vmatpush3.bf16.msra.mxu0 %v981_v50 }
  0x5a   : > { %961 = vmatmul.mubr.msk.bf16.vlgmr.msra.gmra.mrb[4].mxu0 %vm342_vm1, %v688_v53 }
 0x11e   : > { %v671_v56 = vpop.f32.mrb[0].mxu1 }
 0x11f   : > { %v954_v57 = vpop.f32.mrb[1].mxu1 }
 0x120   : > { %v674_v58 = vpop.f32.mrb[2].mxu1 }
 0x121   : > { %v955_v1 = vpop.f32.mrb[3].mxu1 }
 0x125   : > { %v616_v59 = vpop.f32.mrb[0].mxu0 }
 0x126   : > { %v672_v60 = vadd.f32 %v671_v56, %v616_v59  ;;  %v946_v61 = vpop.f32.mrb[1].mxu0 }
 0x127   : > { %v619_v62 = vpop.f32.mrb[2].mxu0 }
 0x128   : > { %v675_v63 = vadd.f32 %v674_v58, %v619_v62  ;;  %v947_v0 = vpop.f32.mrb[3].mxu0 }
 0x12d   : > { %v738_v2 = vpop.f32.mrb[4].mxu0 }
 0x12e   : > { %v745_v4 = vadd.f32 %v738_v2, %v672_v60  ;;  %v962_v5 = vpop.f32.mrb[5].mxu0 }
 0x12f   : > { %v741_v8 = vpop.f32.mrb[6].mxu0 }
 0x130   : > { %v754_v9 = vadd.f32 %v915_v3, %v745_v4  ;;  %v746_v10 = vadd.f32 %v741_v8, %v675_v63  ;;  %v963_v11 = vpop.f32.mrb[7].mxu0 }
 0x132   : > { %v925_v12 = vpack.c.bf16 %v754_v9, %v754_v9  ;;  %v755_v13 = vadd.f32 %v915_v3, %v746_v10 }
 0x134   : > { %764 = vst.msk [vmem:[%s331_s15] sm:$0xf] %vm525_vm7, %v925_v12  ;;  %v926_v14 = vpack.c.bf16 %v755_v13, %v755_v13 }
 0x136   : > { %765 = vst.msk [vmem:[%s331_s15 + $0x4] sm:$0xf] %vm525_vm7, %v926_v14 }
 0x137 PF: > { %s18_s24 = sadd.s32 1, %s990_s24  }
 0x138   : > { %p15_p4 = scmp.ge.s32.totalorder %s18_s24, 4  }
 0x13a   :  { %17 = sbr.rel (!%p15_p4) target bundleno = 1 (0x1), region = 97 }

// kernel: decoder_forward.9
= control target key start
LH: loop header
LB: loop body
LE: loop exit
PB: predicated region body
PF: predicated region fallthrough
CT: control target
= control target key end

     0   :  { %11 = vsyncpa [#allocation3], 0  ;;  %s831_s0 = inlined_call_operand.vmem [shape: bf16[2,16,32], index: 0, kind: input, shape index: {}]   ;;  %s832_s1 = inlined_call_operand.vmem [shape: bf16[2,16,32], index: 1, kind: input, shape index: {}]   ;;  %s833_s2 = inlined_call_operand.vmem [shape: f32[2,1,32], index: 2, kind: input, shape index: {}]   ;;  %s834_s3 = inlined_call_operand.vmem [shape: f32[2,1,32], index: 3, kind: input, shape index: {}]   ;;  %s835_s4 = inlined_call_operand.vmem [shape: bf16[1,4,32], index: 4, kind: input, shape index: {}]   ;;  %s836_s5 = inlined_call_operand.vmem [shape: f32[4,1], index: 5, kind: input, shape index: {}]   ;;  %s837_s6 = inlined_call_operand.hbm [shape: f32[2,4,16], index: 6, kind: output, shape index: {}]  }
   0x1   :  { %13 = vsyncpa [#allocation3 + $0x1], 0  ;;  %s701_s21 = smov 0   ;;  %s703_s22 = smov 0  }
   0x2   :  { %s705_s23 = smov 0   ;;  %s707_s24 = smov 0  }
   0x3 LB: > { %s722_s25 = sadd.s32 4294967295, %s660_s24   ;;  %s521_s26 = sadd.s32 4294967294, %s660_s24   ;;  %s660_s24 = sphi %s707_s24, %s843_s24   ;;  %s656_s23 = sphi %s705_s23, %s842_s23   ;;  %s652_s22 = sphi %s703_s22, %s841_s22   ;;  %s648_s21 = sphi %s701_s21, %s840_s21  }
   0x4   : > { %s726_s27 = sadd.s32 1, %s660_s24   ;;  %s172_s28 = sadd.s32 1, %s656_s23 }
   0x5   : > { %s169_s29 = ssub.s32 %s660_s24, %s726_s27  ;;  %p182_p0 = scmp.ne.s32.totalorder %s656_s23, %s652_s22 }
   0x6   : > { %p170_p1 = scmp.eq.s32.totalorder %s169_s29, 0  ;;  %p183_p2 = scmp.eq.s32.totalorder %s722_s25, 1 }
   0x7   : > { %p188_p3 = scmp.ne.s32.totalorder %s652_s22, %s648_s21  ;;  %p189_p4 = scmp.eq.s32.totalorder %s521_s26, 1 }
   0x8   : > { %s737_s30 = scalar_select %p170_p1, %s656_s23, %s172_s28  }
   0x9   : > { %p739_p5 = por %p183_p2, %p182_p0  ;;  %p743_p6 = por %p189_p4, %p188_p3 }
   0xa   : > { %p524_p7 = scmp.ge.s32.totalorder %s660_s24, 1  ;;  %p241_p8 = scmp.lt.s32.totalorder %s660_s24, 3 }
   0xc   : > { %p242_p9 = pnand %p524_p7, %p241_p8 }
   0xd   : > { %p282_p10 = scmp.lt.s32.totalorder (!%p242_p9), %s722_s25, 1  ;;  %v662_v0 = vmov (!%p242_p9), 0.0   ;;  %vm663_vm0 = vmmov (!%p242_p9), 0   ;;  %v364_v1 = vld [vmem:[%s836_s5] sm:$0xf] (!%p242_p9)  ;;  %v664_v2 = vmov (!%p242_p9), 0   ;;  %v336_v32 = vlaneseq (!%p242_p9) }
   0xe   : > { %245 = sbr.rel (%p242_p9) target bundleno = 317 (0x13d), region = 44  ;;  %547 = vmatprep.subr.bf16.mxu0 (!%p242_p9), %v662_v0  ;;  %549 = vmatprep.mubr.msk.bf16.mxu0 (!%p242_p9), %vm663_vm0, %v662_v0  ;;  %vm303_vm1 = vcmask (!%p242_p9), 261120   ;;  %v363_v58 = vld [vmem:[%s835_s4] sm:$0x3] (!%p242_p9)  ;;  %s532_s14 = sshll.u32 (!%p242_p9), %s722_s25, 6  ;;  %vm416_vm4 = vcmask (!%p242_p9), 125952  }
   0xf   : > { %595 = vset.pattern.permute.xlu0 (!%p242_p9), %v664_v2  ;;  %v337_v33 = vshrl.u32 (!%p242_p9), %v336_v32, 7  ;;  %s789_s19 = scalar_lea.hbm (!%p242_p9), %s837_s6, %s532_s14 }
  0x10   : > { %367 = vperm.xlu0 (!%p242_p9), %595, %v364_v1  }
  0x11   : > { %v338_v35 = vsub.s32 (!%p242_p9), 0, %v337_v33 }
  0x15   : > { %s754_s11 = scalar_select %p282_p10, %s722_s25, 1 }
  0x17   : > { %s535_s12 = sshll.u32 %s754_s11, 3  ;;  %s297_s18 = scalar_lea.vmem %s834_s3, %s754_s11 }
  0x18   : > { %s286_s15 = scalar_lea.vmem %s831_s0, %s535_s12  ;;  %v331_v34 = vld [vmem:[%s297_s18] sm:$0x1]  ;;  %s294_s26 = scalar_lea.vmem %s833_s2, %s754_s11 }
  0x19   : > { %v538_v3 = vld [vmem:[%s286_s15] sm:$0xff]   ;;  %s291_s9 = scalar_lea.vmem %s832_s1, %s535_s12  ;;  %s279_s12 = sand.u32 1, %s652_s22  }
  0x1a   : > { %v539_v4 = vunpack.c.l.bf16 %v538_v3  ;;  %v540_v5 = vunpack.c.h.bf16 %v538_v3  ;;  %v333_v38 = vld [vmem:[%s294_s26] sm:$0x1]  ;;  %s525_s13 = sshll.u32 %s279_s12, 2  ;;  %s419_s25 = scalar_lea.sflag [#allocation3], %s279_s12 }
  0x1b   : > { %v542_v45 = vld [vmem:[%s291_s9] sm:$0xff]   ;;  %s281_s15 = scalar_lea.vmem [#allocation2], %s525_s13  ;;  %s665_s26 = smov [#allocation2]  }
  0x1c   : > { %v304_v6 = vsel %vm303_vm1, %v539_v4, 0.0  ;;  %v305_v7 = vsel %vm303_vm1, %v540_v5, 0.0  ;;  %v314_v8 = vmul.f32 %v539_v4, %v539_v4  ;;  %v315_v9 = vmul.f32 %v540_v5, %v540_v5  ;;  %s432_s16 = sshll.u32 %s281_s15, 4  ;;  %s602_s28 = sshll.u32 %s665_s26, 4  ;;  %s791_s16 = int_to_ptr.vmem [resolvable:$true] %s432_s16  ;;  %s603_s28 = int_to_ptr.vmem [resolvable:$false] %s602_s28 }
  0x1d   : > { %v306_v10 = vadd.f32 %v305_v7, %v304_v6  ;;  %v543_v48 = vunpack.c.l.bf16 %v542_v45  ;;  %v544_v49 = vunpack.c.h.bf16 %v542_v45  ;;  %s598_s20 = scalar_lea.vmem %s791_s16, 64  ;;  %s604_s29 = scalar_lea.vmem %s603_s28, 128 }
  0x1e   : > { %v316_v11 = vsel %vm303_vm1, %v314_v8, 0.0  ;;  %v317_v12 = vsel %vm303_vm1, %v315_v9, 0.0  ;;  %p599_p11 = scmp.ne.s32.totalorder %s791_s16, %s598_s20  ;;  %p605_p0 = scmp.lt.s32.totalorder %s791_s16, %s603_s28 }
  0x1f   : > { %v307_v13 = vrot.slane %v306_v10, 4  ;;  %v318_v14 = vadd.f32 %v317_v12, %v316_v11  ;;  %p606_p1 = scmp.lt.s32.totalorder %s604_s29, %s598_s20 }
  0x20   : > { %p600_p12 = pnand %p599_p11, %p739_p5 }
  0x21   : > { %v308_v15 = vadd.f32 %v307_v13, %v306_v10  ;;  %v319_v16 = vrot.slane %v318_v14, 4  ;;  %p607_p2 = por %p606_p1, %p605_p0 }
  0x22   : > { %p601_p13 = pneg %p600_p12 }
  0x23   : > { %v309_v17 = vrot.slane %v308_v15, 2  ;;  %v320_v18 = vadd.f32 %v319_v16, %v318_v14 }
  0x24   : > { %p608_p3 = pnand %p607_p2, %p601_p13 }
  0x25   : > { %v310_v19 = vadd.f32 %v309_v17, %v308_v15  ;;  %v321_v20 = vrot.slane %v320_v18, 2 }
  0x27   : > { %v311_v21 = vrot.slane %v310_v19, 1  ;;  %v322_v22 = vadd.f32 %v321_v20, %v320_v18 }
  0x29   : > { %v312_v23 = vadd.f32 %v311_v21, %v310_v19  ;;  %v323_v24 = vrot.slane %v322_v22, 1 }
  0x2b   : > { %v313_v25 = vmul.f32 0.0625, %v312_v23  ;;  %v324_v26 = vadd.f32 %v323_v24, %v322_v22 }
  0x2d   : > { %v325_v27 = vmul.f32 0.0625, %v324_v26  ;;  %v326_v28 = vmul.f32 %v313_v25, %v313_v25 }
  0x2f   : > { %v327_v29 = vsub.f32 %v325_v27, %v326_v28 }
  0x31   : > { %v328_v30 = vmax.f32 %v327_v29, 0.0 }
  0x33   : > { %v329_v31 = vadd.f32 1e-05, %v328_v30 }
  0x35   : > { %596 = vrsqrt.f32 %v329_v31 }
  0x3f   : > { %v597_v36 = vpop.eup %596 }
  0x40   : > { %v332_v37 = vmul.f32 %v597_v36, %v331_v34 }
  0x42   : > { %v334_v39 = vmul.f32 %v332_v37, %v313_v25  ;;  %v339_v40 = vrot.slane %v332_v37, %v338_v35 }
  0x44   : > { %v335_v41 = vsub.f32 %v333_v38, %v334_v39  ;;  %v340_v42 = vmul.f32 %v539_v4, %v339_v40  ;;  %v341_v43 = vmul.f32 %v540_v5, %v339_v40 }
  0x46   : > { %v346_v44 = vrot.slane %v335_v41, %v338_v35 }
  0x48   : > { %v348_v46 = vadd.f32 %v346_v44, %v340_v42  ;;  %v349_v47 = vadd.f32 %v346_v44, %v341_v43 }
  0x4a   : > { %vm350_vm2 = vcmp.ge.f32.partialorder %v348_v46, 0.0  ;;  %vm351_vm3 = vcmp.ge.f32.partialorder %v349_v47, 0.0  ;;  %v352_v50 = vmul.f32 0.01, %v348_v46  ;;  %v353_v51 = vmul.f32 0.01, %v349_v47 }
  0x4c   : > { %v354_v52 = vsel %vm350_vm2, %v348_v46, %v352_v50  ;;  %v355_v53 = vsel %vm351_vm3, %v349_v47, %v353_v51 }
  0x4d   : > { %v360_v54 = vadd.f32 %v543_v48, %v354_v52  ;;  %v361_v55 = vadd.f32 %v544_v49, %v355_v53 }
  0x4f   : > { %v362_v56 = vpack.c.bf16 %v361_v55, %v360_v54 }
  0x51   : > { %v374_v57 = vsel %vm303_vm1, %v362_v56, 0 }
  0x52   : > { %548 = vmatpush3.bf16.xpose.msra.mxu0 %v374_v57 }
  0x59   : > { %550 = vmatmul.mubr.msk.bf16.vlgmr.msra.gmra.mrb[0].mxu0 %vm303_vm1, %v363_v58 }
  0x8f   : > { %v368_v59 = vpop.permute.xlu0 %367 }
 0x12c   : > { %v410_v60 = vpop.f32.mrb[0].mxu0 }
 0x12d   : > { %v411_v61 = vadd.f32 %v410_v60, %v368_v59  ;;  %v551_v62 = vpop.f32.mrb[1].mxu0 }
 0x12e   : > { %v413_v63 = vpop.f32.mrb[2].mxu0 }
 0x12f   : > { %v552_v0 = vpop.f32.mrb[3].mxu0  ;;  %417 = vst.msk [vmem:[%s281_s15] sm:$0xf] %vm416_vm4, %v411_v61 }
 0x130   : > { %611 = shalt.err (!%p608_p3)
}
 0x131   : > { %s612_s9 = scalar_lea.hbm %s789_s19, 64  ;;  %s616_s12 = scalar_lea.hbm %s837_s6, 128 }
 0x132   : > { %p613_p4 = scmp.ne.s32.totalorder %s789_s19, %s612_s9  ;;  %p617_p9 = scmp.lt.u32.totalorder %s789_s19, %s837_s6 }
 0x133   : > { %p618_p10 = scmp.lt.u32.totalorder %s616_s12, %s612_s9  ;;  %p620_p12 = scmp.lt.u32.totalorder %s612_s9, %s789_s19 }
 0x134   : > { %p614_p7 = pnand %p613_p4, %p739_p5 }
 0x135   : > { %p619_p11 = por %p618_p10, %p617_p9 }
 0x136   : > { %p615_p8 = pneg %p614_p7 }
 0x137   : > { %p621_p13 = por %p620_p12, %p619_p11 }
 0x139   : > { %p622_p0 = pnand %p621_p13, %p615_p8 }
 0x13b   : > { %625 = shalt.err (!%p622_p0)
}
 0x13c   : > { %553 = dma.vmem_to_hbm [thread:$0]  (%p739_p5), %s791_s16, 64, %s789_s19, %s419_s25  }
 0x13d PF: > { %p559_p1 = scmp.ge.s32.totalorder %s660_s24, 2  ;;  %s444_s15 = sand.u32 1, %s648_s21  }
 0x13e   : > { %s445_s17 = scalar_lea.sflag [#allocation3], %s444_s15 }
 0x13f   : > { %p556_p2 = pnand %p559_p1, %p743_p6 }
 0x141   : > { %643 = dma.done.wait (!%p556_p2), %s445_s17, 64  }
 0x142   : > { %645 = vsyncadd (!%p556_p2), %s445_s17, 4294967232  ;;  %p16_p3 = scmp.ge.s32.totalorder %s726_s27, 4   ;;  %s840_s21 = smov %s652_s22 }
 0x143   : > { %s841_s22 = smov %s656_s23  ;;  %s842_s23 = smov %s737_s30 }
 0x144   : > { %s843_s24 = smov %s726_s27  ;;  %18 = sbr.rel (!%p16_p3) target bundleno = 3 (0x3), region = 88 }
 0x14b   :  { %450 = vsyncpa [#allocation3], 1 }
 0x14c   :  { %452 = vsyncpa [#allocation3 + $0x1], 1 }

</bundles_post_ra>
